<compile_context>
chip_gen: v5e
topology: v5e:2x2
jax: 0.10.0
libtpu: 0.0.40
codegen_flags: <defaults>
</compile_context>

<pallas_src>
import functools

import jax
import jax.numpy as jnp
from jax.experimental import pallas as pl
from jax.experimental.pallas import tpu as pltpu


# ----------------------------------------------------------------------------
# In-kernel helpers (values resident in VMEM)
# ----------------------------------------------------------------------------
def _mxu_dot(a, b):
    """MXU matmul: bf16 operands, f32 accumulation."""
    return jnp.dot(a.astype(jnp.bfloat16), b.astype(jnp.bfloat16),
                   preferred_element_type=jnp.float32)


def _layernorm(x, g, b, eps):
    mean = jnp.mean(x, axis=-1, keepdims=True)
    var = jnp.mean((x - mean) ** 2, axis=-1, keepdims=True)
    return (x - mean) * jax.lax.rsqrt(var + eps) * g + b


# Row layout of the packed (16, H) LN-param / bias array.
_LN_E_G, _LN_E_B, _B_O, _LN1_G, _LN1_B, _B_FFN2, _LN2_G, _LN2_B, _B_POOL = range(9)


# ----------------------------------------------------------------------------
# Single fused kernel: embeddings -> encoder layer -> pooler -> fc
# One grid step per "batch group" (1 group on v5e/v6e, 2 groups on v7x).
# ----------------------------------------------------------------------------
def sentiment_kernel(ids_ref, lens_ref,                       # scalar prefetch (SMEM)
                     word_emb_ref, pos_type_ref, vecs_ref,
                     b_qkv_ref, b_ffn1_ref, b_fc_ref,
                     w_qkv_ref, wo_ref, w_ffn1_ref, w_ffn2_ref,
                     w_pool_ref, w_fc_ref,
                     h_out_ref, logits_ref,
                     *, batch_per_group, seq, n_heads, eps):
    g = pl.program_id(0)
    H = w_qkv_ref.shape[0]
    Dh = H // n_heads
    S = seq
    Bg = batch_per_group
    scale = 1.0 / (Dh ** 0.5)

    vecs = vecs_ref[...]                                       # (16, H) packed params

    def vrow(i):
        return vecs[i:i + 1, :]                                # (1, H)

    pos_type = pos_type_ref[...]                               # (S, H) f32

    # --- in-kernel embedding gather: token rows via dynamic sublane slices ---
    rows = []
    for b in range(Bg):
        gb = g * Bg + b
        for t in range(S):
            tok = ids_ref[gb, t]                               # SMEM scalar (int32)
            rows.append(word_emb_ref[pl.ds(tok, 1), :] + pos_type[t:t + 1, :])
    emb = jnp.concatenate(rows, axis=0)                        # (Bg*S, H) f32

    # --- embedding LayerNorm ---
    h = _layernorm(emb, vrow(_LN_E_G), vrow(_LN_E_B), eps)

    # --- fused QKV projection over the whole stacked group (one MXU pass) ---
    qkv = _mxu_dot(h, w_qkv_ref[...]) + b_qkv_ref[...]         # (Bg*S, 3H) f32

    # --- multi-head attention; mask built in-kernel from SMEM lengths ---
    # TODO(synk): mask assumes prefix-valid attention_mask (lengths), the usual
    # tokenizer output; arbitrary 0/1 patterns would need the full mask passed.
    col = jax.lax.broadcasted_iota(jnp.int32, (1, S), 1)       # key positions
    ctx_batches = []
    for b in range(Bg):
        length = lens_ref[g * Bg + b]
        add_mask = jnp.where(col < length, 0.0, -1e9).astype(jnp.float32)  # (1, S)
        r0 = b * S
        ctx_heads = []
        # TODO(synk): per-head 32-lane slices + lane-concat kept (head-batched 3D
        # einsum needs a lane-splitting reshape that is riskier to lower).
        for hd in range(n_heads):
            q = qkv[r0:r0 + S, hd * Dh:(hd + 1) * Dh]          # (S, Dh)
            k = qkv[r0:r0 + S, H + hd * Dh:H + (hd + 1) * Dh]
            v = qkv[r0:r0 + S, 2 * H + hd * Dh:2 * H + (hd + 1) * Dh]
            sc = jax.lax.dot_general(                           # q @ k^T, no K transpose
                q.astype(jnp.bfloat16), k.astype(jnp.bfloat16),
                (((1,), (1,)), ((), ())),
                preferred_element_type=jnp.float32) * scale     # (S, S) f32
            p = jax.nn.softmax(sc + add_mask, axis=-1)          # f32
            ctx_heads.append(_mxu_dot(p, v))                    # (S, Dh)
        ctx_batches.append(jnp.concatenate(ctx_heads, axis=-1)) # (S, H)
    ctx = jnp.concatenate(ctx_batches, axis=0) if Bg > 1 else ctx_batches[0]

    # --- output projection + residual + LN1 ---
    attn = _mxu_dot(ctx, wo_ref[...]) + vrow(_B_O)
    h1 = _layernorm(h + attn, vrow(_LN1_G), vrow(_LN1_B), eps)

    # --- FFN (gelu) + residual + LN2 ---
    f = _mxu_dot(h1, w_ffn1_ref[...]) + b_ffn1_ref[...]
    # TODO(synk): reference BERT uses erf-GELU; tanh approximation used (EUP-friendly).
    f = jax.nn.gelu(f, approximate=True)
    f = _mxu_dot(f, w_ffn2_ref[...]) + vrow(_B_FFN2)
    h2 = _layernorm(h1 + f, vrow(_LN2_G), vrow(_LN2_B), eps)
    h_out_ref[...] = h2

    # --- pooler + fc fused in: this group's LAST batch element's [CLS] row ---
    cls = h2[(Bg - 1) * S:(Bg - 1) * S + 1, :]                  # (1, H)
    pooled = jnp.tanh(_mxu_dot(cls, w_pool_ref[...]) + vrow(_B_POOL))
    logits = _mxu_dot(pooled, w_fc_ref[...]) + b_fc_ref[...]    # (1, NP) lane-dense
    # broadcast to 8 sublanes so the store is a full, unmasked (8, NP) write
    logits_ref[...] = jnp.broadcast_to(logits, logits_ref.shape)


# ----------------------------------------------------------------------------
# pallas_call wrapper
# ----------------------------------------------------------------------------
def sentiment_net_pallas(params, x, attention_mask, *, n_heads, num_groups, eps=1e-12):
    B, S = x.shape
    word_emb = params["word_emb"]
    VP, H = word_emb.shape
    MP = params["pos_type_emb"].shape[0]
    FFN = params["w_ffn1"].shape[1]
    NP = params["w_fc_pad"].shape[1]
    G = num_groups
    Bg = B // G
    assert B % G == 0 and S % 8 == 0 and H % 128 == 0 and S <= MP

    # per-example valid lengths (prefix mask assumption, see kernel TODO)
    lens = jnp.sum(attention_mask.astype(jnp.int32), axis=-1).astype(jnp.int32)

    def const(shape):  # weight / packed-param tiles: same block every grid step
        return pl.BlockSpec(shape, lambda g, *_: (0,) * len(shape))

    grid_spec = pltpu.PrefetchScalarGridSpec(
        num_scalar_prefetch=2,              # token ids + lengths -> SMEM
        grid=(G,),
        in_specs=[
            const((VP, H)),                                  # word embedding table
            pl.BlockSpec((S, H), lambda g, *_: (0, 0)),      # pos+type emb, first S rows
            const((16, H)),                                  # packed LN params / biases
            const((1, 3 * H)),                               # b_qkv
            const((1, FFN)),                                 # b_ffn1
            const((1, NP)),                                  # b_fc (padded)
            const((H, 3 * H)),                               # fused QKV weight
            const((H, H)),                                   # attention output proj
            const((H, FFN)),                                 # FFN1
            const((FFN, H)),                                 # FFN2
            const((H, H)),                                   # pooler
            const((H, NP)),                                  # fc (padded to 128 lanes)
        ],
        out_specs=[
            pl.BlockSpec((Bg * S, H), lambda g, *_: (g, 0)),  # encoder hidden states
            pl.BlockSpec((8, NP), lambda g, *_: (g, 0)),      # per-group logits row
        ],
    )
    # TODO(synk): for real BERT-base weights (H=768, FFN=3072) the resident-weight
    # design would need K-tiling / single-buffered weight specs on v7x (64 MiB VMEM).
    h, logits = pl.pallas_call(
        functools.partial(sentiment_kernel, batch_per_group=Bg, seq=S,
                          n_heads=n_heads, eps=eps),
        grid_spec=grid_spec,
        out_shape=(jax.ShapeDtypeStruct((B * S, H), jnp.float32),
                   jax.ShapeDtypeStruct((G * 8, NP), jnp.float32)),
        compiler_params=pltpu.CompilerParams(
            dimension_semantics=("parallel",)),
    )(x.astype(jnp.int32), lens,
      params["word_emb"], params["pos_type_emb"], params["vecs"],
      params["b_qkv"], params["b_ffn1"], params["b_fc_pad"],
      params["w_qkv"], params["wo"], params["w_ffn1"], params["w_ffn2"],
      params["w_pool"], params["w_fc_pad"])
    del h  # sequence output is discarded by the module (`_, x = self.bert(...)`)
    return logits


def _default_num_groups(batch):
    """2-way batch-parallel grid on dual-TensorCore chips (v7x), 1 otherwise."""
    n_tc = 1
    try:
        if "v7" in jax.devices()[0].device_kind.lower():
            n_tc = 2
    except Exception:
        pass
    g = min(n_tc, max(batch, 1))
    while g > 1 and batch % g:
        g -= 1
    return max(g, 1)


def sentiment_net_forward(params, x, attention_mask, *, n_heads, output_dim,
                          num_groups=1):
    logits = sentiment_net_pallas(params, x, attention_mask,
                                  n_heads=n_heads, num_groups=num_groups)
    # `x = self.fc(x[-1])`: only the LAST batch element's pooled [CLS] is used;
    # the last group's row holds it (its last batch element is global index B-1).
    return logits[(num_groups - 1) * 8, :output_dim]            # (output_dim,)


# ----------------------------------------------------------------------------
# Synthetic parameter init (pretrained weights not reproducible in-script)
# ----------------------------------------------------------------------------
def init_params(key, vocab, max_pos, hidden, ffn, output_dim):
    ks = jax.random.split(key, 9)
    s = 0.02
    wdt = jnp.bfloat16                       # matmul weights feed the MXU in bf16
    vp = -(-vocab // 8) * 8                  # sublane-pad the vocab dimension
    n_pad = max(128, -(-output_dim // 128) * 128)  # lane-dense fc output width

    word_emb = jnp.zeros((vp, hidden), jnp.float32)
    word_emb = word_emb.at[:vocab].set(
        jax.random.normal(ks[0], (vocab, hidden), jnp.float32) * s)

    # position embedding + token-type-0 embedding, pre-summed at init
    pos_type = (jax.random.normal(ks[1], (max_pos, hidden), jnp.float32) * s
                + jax.random.normal(ks[2], (1, hidden), jnp.float32) * s)

    # packed (16, H): rows 0..8 = [ln_e_g, ln_e_b, bo, ln1_g, ln1_b, b_ffn2,
    #                              ln2_g, ln2_b, b_pool]; gammas=1, betas/biases=0
    vecs = jnp.zeros((16, hidden), jnp.float32)
    vecs = vecs.at[jnp.array([_LN_E_G, _LN1_G, _LN2_G])].set(1.0)

    w_fc = jnp.zeros((hidden, n_pad), jnp.float32)
    w_fc = w_fc.at[:, :output_dim].set(
        jax.random.normal(ks[8], (hidden, output_dim), jnp.float32) * s)

    return {
        "word_emb": word_emb,
        "pos_type_emb": pos_type,
        "vecs": vecs,
        "b_qkv": jnp.zeros((1, 3 * hidden), jnp.float32),
        "b_ffn1": jnp.zeros((1, ffn), jnp.float32),
        "b_fc_pad": jnp.zeros((1, n_pad), jnp.float32),
        "w_qkv": (jax.random.normal(ks[3], (hidden, 3 * hidden), jnp.float32) * s).astype(wdt),
        "wo": (jax.random.normal(ks[4], (hidden, hidden), jnp.float32) * s).astype(wdt),
        "w_ffn1": (jax.random.normal(ks[5], (hidden, ffn), jnp.float32) * s).astype(wdt),
        "w_ffn2": (jax.random.normal(ks[6], (ffn, hidden), jnp.float32) * s).astype(wdt),
        "w_pool": (jax.random.normal(ks[7], (hidden, hidden), jnp.float32) * s).astype(wdt),
        "w_fc_pad": w_fc.astype(wdt),
    }


if __name__ == "__main__":
    # small, BERT-consistent shapes
    BATCH, SEQ = 2, 8
    VOCAB, MAX_POS = 100, 64
    EMBEDDING_DIM = HIDDEN_DIM = 128          # embedding_dim == hidden size (as in BERT)
    N_HEADS, FFN = 4, 256
    OUTPUT_DIM = 3

    key = jax.random.PRNGKey(0)
    k_param, k_tok = jax.random.split(key, 2)

    params = init_params(k_param, VOCAB, MAX_POS, HIDDEN_DIM, FFN, OUTPUT_DIM)

    x = jax.random.randint(k_tok, (BATCH, SEQ), 0, VOCAB, dtype=jnp.int32)
    # attention mask: first few tokens valid, rest padding
    lens = jnp.array([SEQ, SEQ - 3], dtype=jnp.int32)
    attention_mask = (jnp.arange(SEQ)[None, :] < lens[:, None]).astype(jnp.int32)

    fwd = jax.jit(functools.partial(
        sentiment_net_forward, n_heads=N_HEADS, output_dim=OUTPUT_DIM,
        num_groups=_default_num_groups(BATCH)))
    logits = fwd(params, x, attention_mask)
    jax.block_until_ready(logits)

    assert logits.shape == (OUTPUT_DIM,), logits.shape
    print("KERNEL_OK")
</pallas_src>

<mosaic_0001>
module attributes {stable_mosaic.version = 11 : i64} {
  func.func @sentiment_kernel(%arg0: i32, %arg1: memref<2x8xi32, #tpu.memory_space<smem>>, %arg2: memref<2xi32, #tpu.memory_space<smem>>, %arg3: memref<104x128xf32, #tpu.memory_space<vmem>>, %arg4: memref<8x128xf32, #tpu.memory_space<vmem>>, %arg5: memref<16x128xf32, #tpu.memory_space<vmem>>, %arg6: memref<1x384xf32, #tpu.memory_space<vmem>>, %arg7: memref<1x256xf32, #tpu.memory_space<vmem>>, %arg8: memref<1x128xf32, #tpu.memory_space<vmem>>, %arg9: memref<128x384xbf16, #tpu.memory_space<vmem>>, %arg10: memref<128x128xbf16, #tpu.memory_space<vmem>>, %arg11: memref<128x256xbf16, #tpu.memory_space<vmem>>, %arg12: memref<256x128xbf16, #tpu.memory_space<vmem>>, %arg13: memref<128x128xbf16, #tpu.memory_space<vmem>>, %arg14: memref<128x128xbf16, #tpu.memory_space<vmem>>, %arg15: memref<16x128xf32, #tpu.memory_space<vmem>>, %arg16: memref<8x128xf32, #tpu.memory_space<vmem>>) attributes {dimension_semantics = [#tpu.dimension_semantics<parallel>], iteration_bounds = array<i64: 1>, scalar_prefetch = 2 : i64, scratch_operands = 0 : i64, tpu.core_type = #tpu.core_type<tc>, window_params = [{pipeline_mode = #tpu.pipeline_mode<synchronous>, transform_indices = @transform_0, window_bounds = array<i64: 104, 128>}, {transform_indices = @transform_1, window_bounds = array<i64: 8, 128>}, {pipeline_mode = #tpu.pipeline_mode<synchronous>, transform_indices = @transform_2, window_bounds = array<i64: 16, 128>}, {pipeline_mode = #tpu.pipeline_mode<synchronous>, transform_indices = @transform_3, window_bounds = array<i64: 1, 384>}, {pipeline_mode = #tpu.pipeline_mode<synchronous>, transform_indices = @transform_4, window_bounds = array<i64: 1, 256>}, {pipeline_mode = #tpu.pipeline_mode<synchronous>, transform_indices = @transform_5, window_bounds = array<i64: 1, 128>}, {pipeline_mode = #tpu.pipeline_mode<synchronous>, transform_indices = @transform_6, window_bounds = array<i64: 128, 384>}, {pipeline_mode = #tpu.pipeline_mode<synchronous>, transform_indices = @transform_7, window_bounds = array<i64: 128, 128>}, {pipeline_mode = #tpu.pipeline_mode<synchronous>, transform_indices = @transform_8, window_bounds = array<i64: 128, 256>}, {pipeline_mode = #tpu.pipeline_mode<synchronous>, transform_indices = @transform_9, window_bounds = array<i64: 256, 128>}, {pipeline_mode = #tpu.pipeline_mode<synchronous>, transform_indices = @transform_10, window_bounds = array<i64: 128, 128>}, {pipeline_mode = #tpu.pipeline_mode<synchronous>, transform_indices = @transform_11, window_bounds = array<i64: 128, 128>}, {transform_indices = @transform_12, window_bounds = array<i64: 16, 128>}, {transform_indices = @transform_13, window_bounds = array<i64: 8, 128>}]} {
    %c0 = arith.constant 0 : index
    %c0_0 = arith.constant 0 : index
    %0 = vector.load %arg5[%c0, %c0_0] : memref<16x128xf32, #tpu.memory_space<vmem>>, vector<16x128xf32>
    %c0_1 = arith.constant 0 : index
    %c0_2 = arith.constant 0 : index
    %1 = vector.load %arg4[%c0_1, %c0_2] : memref<8x128xf32, #tpu.memory_space<vmem>>, vector<8x128xf32>
    %c2_i32 = arith.constant 2 : i32
    %2 = arith.muli %arg0, %c2_i32 : i32
    %c0_i32 = arith.constant 0 : i32
    %3 = arith.addi %2, %c0_i32 : i32
    %4 = arith.index_cast %3 : i32 to index
    %c0_3 = arith.constant 0 : index
    %5 = memref.load %arg1[%4, %c0_3] : memref<2x8xi32, #tpu.memory_space<smem>>
    %6 = arith.index_cast %5 : i32 to index
    %c0_4 = arith.constant 0 : index
    %7 = vector.load %arg3[%6, %c0_4] : memref<104x128xf32, #tpu.memory_space<vmem>>, vector<1x128xf32>
    %8 = vector.extract_strided_slice %1 {offsets = [0, 0], sizes = [1, 128], strides = [1, 1]} : vector<8x128xf32> to vector<1x128xf32>
    %9 = arith.addf %7, %8 : vector<1x128xf32>
    %10 = arith.index_cast %3 : i32 to index
    %c1 = arith.constant 1 : index
    %11 = memref.load %arg1[%10, %c1] : memref<2x8xi32, #tpu.memory_space<smem>>
    %12 = arith.index_cast %11 : i32 to index
    %c0_5 = arith.constant 0 : index
    %13 = vector.load %arg3[%12, %c0_5] : memref<104x128xf32, #tpu.memory_space<vmem>>, vector<1x128xf32>
    %14 = vector.extract_strided_slice %1 {offsets = [1, 0], sizes = [1, 128], strides = [1, 1]} : vector<8x128xf32> to vector<1x128xf32>
    %15 = arith.addf %13, %14 : vector<1x128xf32>
    %16 = arith.index_cast %3 : i32 to index
    %c2 = arith.constant 2 : index
    %17 = memref.load %arg1[%16, %c2] : memref<2x8xi32, #tpu.memory_space<smem>>
    %18 = arith.index_cast %17 : i32 to index
    %c0_6 = arith.constant 0 : index
    %19 = vector.load %arg3[%18, %c0_6] : memref<104x128xf32, #tpu.memory_space<vmem>>, vector<1x128xf32>
    %20 = vector.extract_strided_slice %1 {offsets = [2, 0], sizes = [1, 128], strides = [1, 1]} : vector<8x128xf32> to vector<1x128xf32>
    %21 = arith.addf %19, %20 : vector<1x128xf32>
    %22 = arith.index_cast %3 : i32 to index
    %c3 = arith.constant 3 : index
    %23 = memref.load %arg1[%22, %c3] : memref<2x8xi32, #tpu.memory_space<smem>>
    %24 = arith.index_cast %23 : i32 to index
    %c0_7 = arith.constant 0 : index
    %25 = vector.load %arg3[%24, %c0_7] : memref<104x128xf32, #tpu.memory_space<vmem>>, vector<1x128xf32>
    %26 = vector.extract_strided_slice %1 {offsets = [3, 0], sizes = [1, 128], strides = [1, 1]} : vector<8x128xf32> to vector<1x128xf32>
    %27 = arith.addf %25, %26 : vector<1x128xf32>
    %28 = arith.index_cast %3 : i32 to index
    %c4 = arith.constant 4 : index
    %29 = memref.load %arg1[%28, %c4] : memref<2x8xi32, #tpu.memory_space<smem>>
    %30 = arith.index_cast %29 : i32 to index
    %c0_8 = arith.constant 0 : index
    %31 = vector.load %arg3[%30, %c0_8] : memref<104x128xf32, #tpu.memory_space<vmem>>, vector<1x128xf32>
    %32 = vector.extract_strided_slice %1 {offsets = [4, 0], sizes = [1, 128], strides = [1, 1]} : vector<8x128xf32> to vector<1x128xf32>
    %33 = arith.addf %31, %32 : vector<1x128xf32>
    %34 = arith.index_cast %3 : i32 to index
    %c5 = arith.constant 5 : index
    %35 = memref.load %arg1[%34, %c5] : memref<2x8xi32, #tpu.memory_space<smem>>
    %36 = arith.index_cast %35 : i32 to index
    %c0_9 = arith.constant 0 : index
    %37 = vector.load %arg3[%36, %c0_9] : memref<104x128xf32, #tpu.memory_space<vmem>>, vector<1x128xf32>
    %38 = vector.extract_strided_slice %1 {offsets = [5, 0], sizes = [1, 128], strides = [1, 1]} : vector<8x128xf32> to vector<1x128xf32>
    %39 = arith.addf %37, %38 : vector<1x128xf32>
    %40 = arith.index_cast %3 : i32 to index
    %c6 = arith.constant 6 : index
    %41 = memref.load %arg1[%40, %c6] : memref<2x8xi32, #tpu.memory_space<smem>>
    %42 = arith.index_cast %41 : i32 to index
    %c0_10 = arith.constant 0 : index
    %43 = vector.load %arg3[%42, %c0_10] : memref<104x128xf32, #tpu.memory_space<vmem>>, vector<1x128xf32>
    %44 = vector.extract_strided_slice %1 {offsets = [6, 0], sizes = [1, 128], strides = [1, 1]} : vector<8x128xf32> to vector<1x128xf32>
    %45 = arith.addf %43, %44 : vector<1x128xf32>
    %46 = arith.index_cast %3 : i32 to index
    %c7 = arith.constant 7 : index
    %47 = memref.load %arg1[%46, %c7] : memref<2x8xi32, #tpu.memory_space<smem>>
    %48 = arith.index_cast %47 : i32 to index
    %c0_11 = arith.constant 0 : index
    %49 = vector.load %arg3[%48, %c0_11] : memref<104x128xf32, #tpu.memory_space<vmem>>, vector<1x128xf32>
    %50 = vector.extract_strided_slice %1 {offsets = [7, 0], sizes = [1, 128], strides = [1, 1]} : vector<8x128xf32> to vector<1x128xf32>
    %51 = arith.addf %49, %50 : vector<1x128xf32>
    %c2_i32_12 = arith.constant 2 : i32
    %52 = arith.muli %arg0, %c2_i32_12 : i32
    %c1_i32 = arith.constant 1 : i32
    %53 = arith.addi %52, %c1_i32 : i32
    %54 = arith.index_cast %53 : i32 to index
    %c0_13 = arith.constant 0 : index
    %55 = memref.load %arg1[%54, %c0_13] : memref<2x8xi32, #tpu.memory_space<smem>>
    %56 = arith.index_cast %55 : i32 to index
    %c0_14 = arith.constant 0 : index
    %57 = vector.load %arg3[%56, %c0_14] : memref<104x128xf32, #tpu.memory_space<vmem>>, vector<1x128xf32>
    %58 = vector.extract_strided_slice %1 {offsets = [0, 0], sizes = [1, 128], strides = [1, 1]} : vector<8x128xf32> to vector<1x128xf32>
    %59 = arith.addf %57, %58 : vector<1x128xf32>
    %60 = arith.index_cast %53 : i32 to index
    %c1_15 = arith.constant 1 : index
    %61 = memref.load %arg1[%60, %c1_15] : memref<2x8xi32, #tpu.memory_space<smem>>
    %62 = arith.index_cast %61 : i32 to index
    %c0_16 = arith.constant 0 : index
    %63 = vector.load %arg3[%62, %c0_16] : memref<104x128xf32, #tpu.memory_space<vmem>>, vector<1x128xf32>
    %64 = vector.extract_strided_slice %1 {offsets = [1, 0], sizes = [1, 128], strides = [1, 1]} : vector<8x128xf32> to vector<1x128xf32>
    %65 = arith.addf %63, %64 : vector<1x128xf32>
    %66 = arith.index_cast %53 : i32 to index
    %c2_17 = arith.constant 2 : index
    %67 = memref.load %arg1[%66, %c2_17] : memref<2x8xi32, #tpu.memory_space<smem>>
    %68 = arith.index_cast %67 : i32 to index
    %c0_18 = arith.constant 0 : index
    %69 = vector.load %arg3[%68, %c0_18] : memref<104x128xf32, #tpu.memory_space<vmem>>, vector<1x128xf32>
    %70 = vector.extract_strided_slice %1 {offsets = [2, 0], sizes = [1, 128], strides = [1, 1]} : vector<8x128xf32> to vector<1x128xf32>
    %71 = arith.addf %69, %70 : vector<1x128xf32>
    %72 = arith.index_cast %53 : i32 to index
    %c3_19 = arith.constant 3 : index
    %73 = memref.load %arg1[%72, %c3_19] : memref<2x8xi32, #tpu.memory_space<smem>>
    %74 = arith.index_cast %73 : i32 to index
    %c0_20 = arith.constant 0 : index
    %75 = vector.load %arg3[%74, %c0_20] : memref<104x128xf32, #tpu.memory_space<vmem>>, vector<1x128xf32>
    %76 = vector.extract_strided_slice %1 {offsets = [3, 0], sizes = [1, 128], strides = [1, 1]} : vector<8x128xf32> to vector<1x128xf32>
    %77 = arith.addf %75, %76 : vector<1x128xf32>
    %78 = arith.index_cast %53 : i32 to index
    %c4_21 = arith.constant 4 : index
    %79 = memref.load %arg1[%78, %c4_21] : memref<2x8xi32, #tpu.memory_space<smem>>
    %80 = arith.index_cast %79 : i32 to index
    %c0_22 = arith.constant 0 : index
    %81 = vector.load %arg3[%80, %c0_22] : memref<104x128xf32, #tpu.memory_space<vmem>>, vector<1x128xf32>
    %82 = vector.extract_strided_slice %1 {offsets = [4, 0], sizes = [1, 128], strides = [1, 1]} : vector<8x128xf32> to vector<1x128xf32>
    %83 = arith.addf %81, %82 : vector<1x128xf32>
    %84 = arith.index_cast %53 : i32 to index
    %c5_23 = arith.constant 5 : index
    %85 = memref.load %arg1[%84, %c5_23] : memref<2x8xi32, #tpu.memory_space<smem>>
    %86 = arith.index_cast %85 : i32 to index
    %c0_24 = arith.constant 0 : index
    %87 = vector.load %arg3[%86, %c0_24] : memref<104x128xf32, #tpu.memory_space<vmem>>, vector<1x128xf32>
    %88 = vector.extract_strided_slice %1 {offsets = [5, 0], sizes = [1, 128], strides = [1, 1]} : vector<8x128xf32> to vector<1x128xf32>
    %89 = arith.addf %87, %88 : vector<1x128xf32>
    %90 = arith.index_cast %53 : i32 to index
    %c6_25 = arith.constant 6 : index
    %91 = memref.load %arg1[%90, %c6_25] : memref<2x8xi32, #tpu.memory_space<smem>>
    %92 = arith.index_cast %91 : i32 to index
    %c0_26 = arith.constant 0 : index
    %93 = vector.load %arg3[%92, %c0_26] : memref<104x128xf32, #tpu.memory_space<vmem>>, vector<1x128xf32>
    %94 = vector.extract_strided_slice %1 {offsets = [6, 0], sizes = [1, 128], strides = [1, 1]} : vector<8x128xf32> to vector<1x128xf32>
    %95 = arith.addf %93, %94 : vector<1x128xf32>
    %96 = arith.index_cast %53 : i32 to index
    %c7_27 = arith.constant 7 : index
    %97 = memref.load %arg1[%96, %c7_27] : memref<2x8xi32, #tpu.memory_space<smem>>
    %98 = arith.index_cast %97 : i32 to index
    %c0_28 = arith.constant 0 : index
    %99 = vector.load %arg3[%98, %c0_28] : memref<104x128xf32, #tpu.memory_space<vmem>>, vector<1x128xf32>
    %100 = vector.extract_strided_slice %1 {offsets = [7, 0], sizes = [1, 128], strides = [1, 1]} : vector<8x128xf32> to vector<1x128xf32>
    %101 = arith.addf %99, %100 : vector<1x128xf32>
    %102 = tpu.concatenate %9, %15, %21, %27, %33, %39, %45, %51, %59, %65, %71, %77, %83, %89, %95, %101 in 0 : vector<1x128xf32>, vector<1x128xf32>, vector<1x128xf32>, vector<1x128xf32>, vector<1x128xf32>, vector<1x128xf32>, vector<1x128xf32>, vector<1x128xf32>, vector<1x128xf32>, vector<1x128xf32>, vector<1x128xf32>, vector<1x128xf32>, vector<1x128xf32>, vector<1x128xf32>, vector<1x128xf32>, vector<1x128xf32> -> vector<16x128xf32>
    %103 = vector.extract_strided_slice %0 {offsets = [0, 0], sizes = [1, 128], strides = [1, 1]} : vector<16x128xf32> to vector<1x128xf32>
    %104 = vector.extract_strided_slice %0 {offsets = [1, 0], sizes = [1, 128], strides = [1, 1]} : vector<16x128xf32> to vector<1x128xf32>
    %cst = arith.constant dense<0.000000e+00> : vector<16xf32>
    %105 = vector.multi_reduction <add>, %102, %cst [1] : vector<16x128xf32> to vector<16xf32>
    %106 = vector.shape_cast %105 : vector<16xf32> to vector<16x1xf32>
    %cst_29 = arith.constant 1.280000e+02 : f32
    %107 = vector.broadcast %cst_29 : f32 to vector<16x1xf32>
    %108 = arith.divf %106, %107 : vector<16x1xf32>
    %109 = vector.broadcast %108 : vector<16x1xf32> to vector<16x128xf32>
    %110 = arith.subf %102, %109 : vector<16x128xf32>
    %111 = arith.mulf %110, %110 : vector<16x128xf32>
    %cst_30 = arith.constant dense<0.000000e+00> : vector<16xf32>
    %112 = vector.multi_reduction <add>, %111, %cst_30 [1] : vector<16x128xf32> to vector<16xf32>
    %113 = vector.shape_cast %112 : vector<16xf32> to vector<16x1xf32>
    %cst_31 = arith.constant 1.280000e+02 : f32
    %114 = vector.broadcast %cst_31 : f32 to vector<16x1xf32>
    %115 = arith.divf %113, %114 : vector<16x1xf32>
    %116 = vector.broadcast %108 : vector<16x1xf32> to vector<16x128xf32>
    %117 = arith.subf %102, %116 : vector<16x128xf32>
    %cst_32 = arith.constant 9.99999996E-13 : f32
    %118 = vector.broadcast %cst_32 : f32 to vector<16x1xf32>
    %119 = arith.addf %115, %118 : vector<16x1xf32>
    %120 = math.rsqrt %119 : vector<16x1xf32>
    %121 = vector.broadcast %120 : vector<16x1xf32> to vector<16x128xf32>
    %122 = arith.mulf %117, %121 : vector<16x128xf32>
    %123 = vector.broadcast %103 : vector<1x128xf32> to vector<16x128xf32>
    %124 = arith.mulf %122, %123 : vector<16x128xf32>
    %125 = vector.broadcast %104 : vector<1x128xf32> to vector<16x128xf32>
    %126 = arith.addf %124, %125 : vector<16x128xf32>
    %c0_33 = arith.constant 0 : index
    %c0_34 = arith.constant 0 : index
    %127 = vector.load %arg9[%c0_33, %c0_34] : memref<128x384xbf16, #tpu.memory_space<vmem>>, vector<128x384xbf16>
    %128 = arith.truncf %126 : vector<16x128xf32> to vector<16x128xbf16>
    %cst_35 = arith.constant dense<0.000000e+00> : vector<16x384xf32>
    %129 = tpu.matmul %128, %127, %cst_35 {dimension_numbers = #tpu.dot_dimension_numbers<[1], [0], [0], [1], [0, 0, 1, 1], [], []>} : vector<16x128xbf16>, vector<128x384xbf16>, vector<16x384xf32> -> vector<16x384xf32>
    %c0_36 = arith.constant 0 : index
    %c0_37 = arith.constant 0 : index
    %130 = vector.load %arg6[%c0_36, %c0_37] : memref<1x384xf32, #tpu.memory_space<vmem>>, vector<1x384xf32>
    %131 = vector.broadcast %130 : vector<1x384xf32> to vector<16x384xf32>
    %132 = arith.addf %129, %131 : vector<16x384xf32>
    %133 = tpu.iota {dimensions = array<i32: 1>} : vector<1x8xi32>
    %c2_i32_38 = arith.constant 2 : i32
    %134 = arith.muli %arg0, %c2_i32_38 : i32
    %c0_i32_39 = arith.constant 0 : i32
    %135 = arith.addi %134, %c0_i32_39 : i32
    %136 = arith.index_cast %135 : i32 to index
    %137 = memref.load %arg2[%136] : memref<2xi32, #tpu.memory_space<smem>>
    %138 = vector.broadcast %137 : i32 to vector<1x8xi32>
    %139 = arith.cmpi slt, %133, %138 : vector<1x8xi32>
    %cst_40 = arith.constant 0.000000e+00 : f32
    %cst_41 = arith.constant -1.000000e+09 : f32
    %140 = vector.broadcast %cst_40 : f32 to vector<1x8xf32>
    %141 = vector.broadcast %cst_41 : f32 to vector<1x8xf32>
    %142 = arith.select %139, %140, %141 : vector<1x8xi1>, vector<1x8xf32>
    %143 = vector.extract_strided_slice %132 {offsets = [0, 0], sizes = [8, 32], strides = [1, 1]} : vector<16x384xf32> to vector<8x32xf32>
    %144 = vector.extract_strided_slice %132 {offsets = [0, 128], sizes = [8, 32], strides = [1, 1]} : vector<16x384xf32> to vector<8x32xf32>
    %145 = vector.extract_strided_slice %132 {offsets = [0, 256], sizes = [8, 32], strides = [1, 1]} : vector<16x384xf32> to vector<8x32xf32>
    %146 = arith.truncf %143 : vector<8x32xf32> to vector<8x32xbf16>
    %147 = arith.truncf %144 : vector<8x32xf32> to vector<8x32xbf16>
    %cst_42 = arith.constant dense<0.000000e+00> : vector<8x8xf32>
    %148 = tpu.matmul %146, %147, %cst_42 {dimension_numbers = #tpu.dot_dimension_numbers<[1], [1], [0], [0], [0, 0, 1, 0], [], []>} : vector<8x32xbf16>, vector<8x32xbf16>, vector<8x8xf32> -> vector<8x8xf32>
    %cst_43 = arith.constant 0.176776692 : f32
    %149 = vector.broadcast %cst_43 : f32 to vector<8x8xf32>
    %150 = arith.mulf %148, %149 : vector<8x8xf32>
    %151 = vector.broadcast %142 : vector<1x8xf32> to vector<8x8xf32>
    %152 = arith.addf %150, %151 : vector<8x8xf32>
    %cst_44 = arith.constant dense<0xFF800000> : vector<8xf32>
    %153 = vector.multi_reduction <maximumf>, %152, %cst_44 [1] : vector<8x8xf32> to vector<8xf32>
    %cst_45 = arith.constant 0xFF800000 : f32
    %154 = vector.broadcast %cst_45 : f32 to vector<8xf32>
    %155 = arith.maximumf %154, %153 : vector<8xf32>
    %156 = vector.shape_cast %155 : vector<8xf32> to vector<8x1xf32>
    %157 = vector.broadcast %156 : vector<8x1xf32> to vector<8x8xf32>
    %158 = arith.subf %152, %157 : vector<8x8xf32>
    %159 = math.exp %158 : vector<8x8xf32>
    %cst_46 = arith.constant dense<0.000000e+00> : vector<8xf32>
    %160 = vector.multi_reduction <add>, %159, %cst_46 [1] : vector<8x8xf32> to vector<8xf32>
    %161 = vector.shape_cast %160 : vector<8xf32> to vector<8x1xf32>
    %162 = vector.broadcast %161 : vector<8x1xf32> to vector<8x8xf32>
    %163 = arith.divf %159, %162 : vector<8x8xf32>
    %164 = arith.truncf %163 : vector<8x8xf32> to vector<8x8xbf16>
    %165 = arith.truncf %145 : vector<8x32xf32> to vector<8x32xbf16>
    %cst_47 = arith.constant dense<0.000000e+00> : vector<8x32xf32>
    %166 = tpu.matmul %164, %165, %cst_47 {dimension_numbers = #tpu.dot_dimension_numbers<[1], [0], [0], [1], [0, 0, 1, 1], [], []>} : vector<8x8xbf16>, vector<8x32xbf16>, vector<8x32xf32> -> vector<8x32xf32>
    %167 = vector.extract_strided_slice %132 {offsets = [0, 32], sizes = [8, 32], strides = [1, 1]} : vector<16x384xf32> to vector<8x32xf32>
    %168 = vector.extract_strided_slice %132 {offsets = [0, 160], sizes = [8, 32], strides = [1, 1]} : vector<16x384xf32> to vector<8x32xf32>
    %169 = vector.extract_strided_slice %132 {offsets = [0, 288], sizes = [8, 32], strides = [1, 1]} : vector<16x384xf32> to vector<8x32xf32>
    %170 = arith.truncf %167 : vector<8x32xf32> to vector<8x32xbf16>
    %171 = arith.truncf %168 : vector<8x32xf32> to vector<8x32xbf16>
    %cst_48 = arith.constant dense<0.000000e+00> : vector<8x8xf32>
    %172 = tpu.matmul %170, %171, %cst_48 {dimension_numbers = #tpu.dot_dimension_numbers<[1], [1], [0], [0], [0, 0, 1, 0], [], []>} : vector<8x32xbf16>, vector<8x32xbf16>, vector<8x8xf32> -> vector<8x8xf32>
    %cst_49 = arith.constant 0.176776692 : f32
    %173 = vector.broadcast %cst_49 : f32 to vector<8x8xf32>
    %174 = arith.mulf %172, %173 : vector<8x8xf32>
    %175 = vector.broadcast %142 : vector<1x8xf32> to vector<8x8xf32>
    %176 = arith.addf %174, %175 : vector<8x8xf32>
    %cst_50 = arith.constant dense<0xFF800000> : vector<8xf32>
    %177 = vector.multi_reduction <maximumf>, %176, %cst_50 [1] : vector<8x8xf32> to vector<8xf32>
    %cst_51 = arith.constant 0xFF800000 : f32
    %178 = vector.broadcast %cst_51 : f32 to vector<8xf32>
    %179 = arith.maximumf %178, %177 : vector<8xf32>
    %180 = vector.shape_cast %179 : vector<8xf32> to vector<8x1xf32>
    %181 = vector.broadcast %180 : vector<8x1xf32> to vector<8x8xf32>
    %182 = arith.subf %176, %181 : vector<8x8xf32>
    %183 = math.exp %182 : vector<8x8xf32>
    %cst_52 = arith.constant dense<0.000000e+00> : vector<8xf32>
    %184 = vector.multi_reduction <add>, %183, %cst_52 [1] : vector<8x8xf32> to vector<8xf32>
    %185 = vector.shape_cast %184 : vector<8xf32> to vector<8x1xf32>
    %186 = vector.broadcast %185 : vector<8x1xf32> to vector<8x8xf32>
    %187 = arith.divf %183, %186 : vector<8x8xf32>
    %188 = arith.truncf %187 : vector<8x8xf32> to vector<8x8xbf16>
    %189 = arith.truncf %169 : vector<8x32xf32> to vector<8x32xbf16>
    %cst_53 = arith.constant dense<0.000000e+00> : vector<8x32xf32>
    %190 = tpu.matmul %188, %189, %cst_53 {dimension_numbers = #tpu.dot_dimension_numbers<[1], [0], [0], [1], [0, 0, 1, 1], [], []>} : vector<8x8xbf16>, vector<8x32xbf16>, vector<8x32xf32> -> vector<8x32xf32>
    %191 = vector.extract_strided_slice %132 {offsets = [0, 64], sizes = [8, 32], strides = [1, 1]} : vector<16x384xf32> to vector<8x32xf32>
    %192 = vector.extract_strided_slice %132 {offsets = [0, 192], sizes = [8, 32], strides = [1, 1]} : vector<16x384xf32> to vector<8x32xf32>
    %193 = vector.extract_strided_slice %132 {offsets = [0, 320], sizes = [8, 32], strides = [1, 1]} : vector<16x384xf32> to vector<8x32xf32>
    %194 = arith.truncf %191 : vector<8x32xf32> to vector<8x32xbf16>
    %195 = arith.truncf %192 : vector<8x32xf32> to vector<8x32xbf16>
    %cst_54 = arith.constant dense<0.000000e+00> : vector<8x8xf32>
    %196 = tpu.matmul %194, %195, %cst_54 {dimension_numbers = #tpu.dot_dimension_numbers<[1], [1], [0], [0], [0, 0, 1, 0], [], []>} : vector<8x32xbf16>, vector<8x32xbf16>, vector<8x8xf32> -> vector<8x8xf32>
    %cst_55 = arith.constant 0.176776692 : f32
    %197 = vector.broadcast %cst_55 : f32 to vector<8x8xf32>
    %198 = arith.mulf %196, %197 : vector<8x8xf32>
    %199 = vector.broadcast %142 : vector<1x8xf32> to vector<8x8xf32>
    %200 = arith.addf %198, %199 : vector<8x8xf32>
    %cst_56 = arith.constant dense<0xFF800000> : vector<8xf32>
    %201 = vector.multi_reduction <maximumf>, %200, %cst_56 [1] : vector<8x8xf32> to vector<8xf32>
    %cst_57 = arith.constant 0xFF800000 : f32
    %202 = vector.broadcast %cst_57 : f32 to vector<8xf32>
    %203 = arith.maximumf %202, %201 : vector<8xf32>
    %204 = vector.shape_cast %203 : vector<8xf32> to vector<8x1xf32>
    %205 = vector.broadcast %204 : vector<8x1xf32> to vector<8x8xf32>
    %206 = arith.subf %200, %205 : vector<8x8xf32>
    %207 = math.exp %206 : vector<8x8xf32>
    %cst_58 = arith.constant dense<0.000000e+00> : vector<8xf32>
    %208 = vector.multi_reduction <add>, %207, %cst_58 [1] : vector<8x8xf32> to vector<8xf32>
    %209 = vector.shape_cast %208 : vector<8xf32> to vector<8x1xf32>
    %210 = vector.broadcast %209 : vector<8x1xf32> to vector<8x8xf32>
    %211 = arith.divf %207, %210 : vector<8x8xf32>
    %212 = arith.truncf %211 : vector<8x8xf32> to vector<8x8xbf16>
    %213 = arith.truncf %193 : vector<8x32xf32> to vector<8x32xbf16>
    %cst_59 = arith.constant dense<0.000000e+00> : vector<8x32xf32>
    %214 = tpu.matmul %212, %213, %cst_59 {dimension_numbers = #tpu.dot_dimension_numbers<[1], [0], [0], [1], [0, 0, 1, 1], [], []>} : vector<8x8xbf16>, vector<8x32xbf16>, vector<8x32xf32> -> vector<8x32xf32>
    %215 = vector.extract_strided_slice %132 {offsets = [0, 96], sizes = [8, 32], strides = [1, 1]} : vector<16x384xf32> to vector<8x32xf32>
    %216 = vector.extract_strided_slice %132 {offsets = [0, 224], sizes = [8, 32], strides = [1, 1]} : vector<16x384xf32> to vector<8x32xf32>
    %217 = vector.extract_strided_slice %132 {offsets = [0, 352], sizes = [8, 32], strides = [1, 1]} : vector<16x384xf32> to vector<8x32xf32>
    %218 = arith.truncf %215 : vector<8x32xf32> to vector<8x32xbf16>
    %219 = arith.truncf %216 : vector<8x32xf32> to vector<8x32xbf16>
    %cst_60 = arith.constant dense<0.000000e+00> : vector<8x8xf32>
    %220 = tpu.matmul %218, %219, %cst_60 {dimension_numbers = #tpu.dot_dimension_numbers<[1], [1], [0], [0], [0, 0, 1, 0], [], []>} : vector<8x32xbf16>, vector<8x32xbf16>, vector<8x8xf32> -> vector<8x8xf32>
    %cst_61 = arith.constant 0.176776692 : f32
    %221 = vector.broadcast %cst_61 : f32 to vector<8x8xf32>
    %222 = arith.mulf %220, %221 : vector<8x8xf32>
    %223 = vector.broadcast %142 : vector<1x8xf32> to vector<8x8xf32>
    %224 = arith.addf %222, %223 : vector<8x8xf32>
    %cst_62 = arith.constant dense<0xFF800000> : vector<8xf32>
    %225 = vector.multi_reduction <maximumf>, %224, %cst_62 [1] : vector<8x8xf32> to vector<8xf32>
    %cst_63 = arith.constant 0xFF800000 : f32
    %226 = vector.broadcast %cst_63 : f32 to vector<8xf32>
    %227 = arith.maximumf %226, %225 : vector<8xf32>
    %228 = vector.shape_cast %227 : vector<8xf32> to vector<8x1xf32>
    %229 = vector.broadcast %228 : vector<8x1xf32> to vector<8x8xf32>
    %230 = arith.subf %224, %229 : vector<8x8xf32>
    %231 = math.exp %230 : vector<8x8xf32>
    %cst_64 = arith.constant dense<0.000000e+00> : vector<8xf32>
    %232 = vector.multi_reduction <add>, %231, %cst_64 [1] : vector<8x8xf32> to vector<8xf32>
    %233 = vector.shape_cast %232 : vector<8xf32> to vector<8x1xf32>
    %234 = vector.broadcast %233 : vector<8x1xf32> to vector<8x8xf32>
    %235 = arith.divf %231, %234 : vector<8x8xf32>
    %236 = arith.truncf %235 : vector<8x8xf32> to vector<8x8xbf16>
    %237 = arith.truncf %217 : vector<8x32xf32> to vector<8x32xbf16>
    %cst_65 = arith.constant dense<0.000000e+00> : vector<8x32xf32>
    %238 = tpu.matmul %236, %237, %cst_65 {dimension_numbers = #tpu.dot_dimension_numbers<[1], [0], [0], [1], [0, 0, 1, 1], [], []>} : vector<8x8xbf16>, vector<8x32xbf16>, vector<8x32xf32> -> vector<8x32xf32>
    %239 = tpu.concatenate %166, %190, %214, %238 in 1 : vector<8x32xf32>, vector<8x32xf32>, vector<8x32xf32>, vector<8x32xf32> -> vector<8x128xf32>
    %c2_i32_66 = arith.constant 2 : i32
    %240 = arith.muli %arg0, %c2_i32_66 : i32
    %c1_i32_67 = arith.constant 1 : i32
    %241 = arith.addi %240, %c1_i32_67 : i32
    %242 = arith.index_cast %241 : i32 to index
    %243 = memref.load %arg2[%242] : memref<2xi32, #tpu.memory_space<smem>>
    %244 = vector.broadcast %243 : i32 to vector<1x8xi32>
    %245 = arith.cmpi slt, %133, %244 : vector<1x8xi32>
    %cst_68 = arith.constant 0.000000e+00 : f32
    %cst_69 = arith.constant -1.000000e+09 : f32
    %246 = vector.broadcast %cst_68 : f32 to vector<1x8xf32>
    %247 = vector.broadcast %cst_69 : f32 to vector<1x8xf32>
    %248 = arith.select %245, %246, %247 : vector<1x8xi1>, vector<1x8xf32>
    %249 = vector.extract_strided_slice %132 {offsets = [8, 0], sizes = [8, 32], strides = [1, 1]} : vector<16x384xf32> to vector<8x32xf32>
    %250 = vector.extract_strided_slice %132 {offsets = [8, 128], sizes = [8, 32], strides = [1, 1]} : vector<16x384xf32> to vector<8x32xf32>
    %251 = vector.extract_strided_slice %132 {offsets = [8, 256], sizes = [8, 32], strides = [1, 1]} : vector<16x384xf32> to vector<8x32xf32>
    %252 = arith.truncf %249 : vector<8x32xf32> to vector<8x32xbf16>
    %253 = arith.truncf %250 : vector<8x32xf32> to vector<8x32xbf16>
    %cst_70 = arith.constant dense<0.000000e+00> : vector<8x8xf32>
    %254 = tpu.matmul %252, %253, %cst_70 {dimension_numbers = #tpu.dot_dimension_numbers<[1], [1], [0], [0], [0, 0, 1, 0], [], []>} : vector<8x32xbf16>, vector<8x32xbf16>, vector<8x8xf32> -> vector<8x8xf32>
    %cst_71 = arith.constant 0.176776692 : f32
    %255 = vector.broadcast %cst_71 : f32 to vector<8x8xf32>
    %256 = arith.mulf %254, %255 : vector<8x8xf32>
    %257 = vector.broadcast %248 : vector<1x8xf32> to vector<8x8xf32>
    %258 = arith.addf %256, %257 : vector<8x8xf32>
    %cst_72 = arith.constant dense<0xFF800000> : vector<8xf32>
    %259 = vector.multi_reduction <maximumf>, %258, %cst_72 [1] : vector<8x8xf32> to vector<8xf32>
    %cst_73 = arith.constant 0xFF800000 : f32
    %260 = vector.broadcast %cst_73 : f32 to vector<8xf32>
    %261 = arith.maximumf %260, %259 : vector<8xf32>
    %262 = vector.shape_cast %261 : vector<8xf32> to vector<8x1xf32>
    %263 = vector.broadcast %262 : vector<8x1xf32> to vector<8x8xf32>
    %264 = arith.subf %258, %263 : vector<8x8xf32>
    %265 = math.exp %264 : vector<8x8xf32>
    %cst_74 = arith.constant dense<0.000000e+00> : vector<8xf32>
    %266 = vector.multi_reduction <add>, %265, %cst_74 [1] : vector<8x8xf32> to vector<8xf32>
    %267 = vector.shape_cast %266 : vector<8xf32> to vector<8x1xf32>
    %268 = vector.broadcast %267 : vector<8x1xf32> to vector<8x8xf32>
    %269 = arith.divf %265, %268 : vector<8x8xf32>
    %270 = arith.truncf %269 : vector<8x8xf32> to vector<8x8xbf16>
    %271 = arith.truncf %251 : vector<8x32xf32> to vector<8x32xbf16>
    %cst_75 = arith.constant dense<0.000000e+00> : vector<8x32xf32>
    %272 = tpu.matmul %270, %271, %cst_75 {dimension_numbers = #tpu.dot_dimension_numbers<[1], [0], [0], [1], [0, 0, 1, 1], [], []>} : vector<8x8xbf16>, vector<8x32xbf16>, vector<8x32xf32> -> vector<8x32xf32>
    %273 = vector.extract_strided_slice %132 {offsets = [8, 32], sizes = [8, 32], strides = [1, 1]} : vector<16x384xf32> to vector<8x32xf32>
    %274 = vector.extract_strided_slice %132 {offsets = [8, 160], sizes = [8, 32], strides = [1, 1]} : vector<16x384xf32> to vector<8x32xf32>
    %275 = vector.extract_strided_slice %132 {offsets = [8, 288], sizes = [8, 32], strides = [1, 1]} : vector<16x384xf32> to vector<8x32xf32>
    %276 = arith.truncf %273 : vector<8x32xf32> to vector<8x32xbf16>
    %277 = arith.truncf %274 : vector<8x32xf32> to vector<8x32xbf16>
    %cst_76 = arith.constant dense<0.000000e+00> : vector<8x8xf32>
    %278 = tpu.matmul %276, %277, %cst_76 {dimension_numbers = #tpu.dot_dimension_numbers<[1], [1], [0], [0], [0, 0, 1, 0], [], []>} : vector<8x32xbf16>, vector<8x32xbf16>, vector<8x8xf32> -> vector<8x8xf32>
    %cst_77 = arith.constant 0.176776692 : f32
    %279 = vector.broadcast %cst_77 : f32 to vector<8x8xf32>
    %280 = arith.mulf %278, %279 : vector<8x8xf32>
    %281 = vector.broadcast %248 : vector<1x8xf32> to vector<8x8xf32>
    %282 = arith.addf %280, %281 : vector<8x8xf32>
    %cst_78 = arith.constant dense<0xFF800000> : vector<8xf32>
    %283 = vector.multi_reduction <maximumf>, %282, %cst_78 [1] : vector<8x8xf32> to vector<8xf32>
    %cst_79 = arith.constant 0xFF800000 : f32
    %284 = vector.broadcast %cst_79 : f32 to vector<8xf32>
    %285 = arith.maximumf %284, %283 : vector<8xf32>
    %286 = vector.shape_cast %285 : vector<8xf32> to vector<8x1xf32>
    %287 = vector.broadcast %286 : vector<8x1xf32> to vector<8x8xf32>
    %288 = arith.subf %282, %287 : vector<8x8xf32>
    %289 = math.exp %288 : vector<8x8xf32>
    %cst_80 = arith.constant dense<0.000000e+00> : vector<8xf32>
    %290 = vector.multi_reduction <add>, %289, %cst_80 [1] : vector<8x8xf32> to vector<8xf32>
    %291 = vector.shape_cast %290 : vector<8xf32> to vector<8x1xf32>
    %292 = vector.broadcast %291 : vector<8x1xf32> to vector<8x8xf32>
    %293 = arith.divf %289, %292 : vector<8x8xf32>
    %294 = arith.truncf %293 : vector<8x8xf32> to vector<8x8xbf16>
    %295 = arith.truncf %275 : vector<8x32xf32> to vector<8x32xbf16>
    %cst_81 = arith.constant dense<0.000000e+00> : vector<8x32xf32>
    %296 = tpu.matmul %294, %295, %cst_81 {dimension_numbers = #tpu.dot_dimension_numbers<[1], [0], [0], [1], [0, 0, 1, 1], [], []>} : vector<8x8xbf16>, vector<8x32xbf16>, vector<8x32xf32> -> vector<8x32xf32>
    %297 = vector.extract_strided_slice %132 {offsets = [8, 64], sizes = [8, 32], strides = [1, 1]} : vector<16x384xf32> to vector<8x32xf32>
    %298 = vector.extract_strided_slice %132 {offsets = [8, 192], sizes = [8, 32], strides = [1, 1]} : vector<16x384xf32> to vector<8x32xf32>
    %299 = vector.extract_strided_slice %132 {offsets = [8, 320], sizes = [8, 32], strides = [1, 1]} : vector<16x384xf32> to vector<8x32xf32>
    %300 = arith.truncf %297 : vector<8x32xf32> to vector<8x32xbf16>
    %301 = arith.truncf %298 : vector<8x32xf32> to vector<8x32xbf16>
    %cst_82 = arith.constant dense<0.000000e+00> : vector<8x8xf32>
    %302 = tpu.matmul %300, %301, %cst_82 {dimension_numbers = #tpu.dot_dimension_numbers<[1], [1], [0], [0], [0, 0, 1, 0], [], []>} : vector<8x32xbf16>, vector<8x32xbf16>, vector<8x8xf32> -> vector<8x8xf32>
    %cst_83 = arith.constant 0.176776692 : f32
    %303 = vector.broadcast %cst_83 : f32 to vector<8x8xf32>
    %304 = arith.mulf %302, %303 : vector<8x8xf32>
    %305 = vector.broadcast %248 : vector<1x8xf32> to vector<8x8xf32>
    %306 = arith.addf %304, %305 : vector<8x8xf32>
    %cst_84 = arith.constant dense<0xFF800000> : vector<8xf32>
    %307 = vector.multi_reduction <maximumf>, %306, %cst_84 [1] : vector<8x8xf32> to vector<8xf32>
    %cst_85 = arith.constant 0xFF800000 : f32
    %308 = vector.broadcast %cst_85 : f32 to vector<8xf32>
    %309 = arith.maximumf %308, %307 : vector<8xf32>
    %310 = vector.shape_cast %309 : vector<8xf32> to vector<8x1xf32>
    %311 = vector.broadcast %310 : vector<8x1xf32> to vector<8x8xf32>
    %312 = arith.subf %306, %311 : vector<8x8xf32>
    %313 = math.exp %312 : vector<8x8xf32>
    %cst_86 = arith.constant dense<0.000000e+00> : vector<8xf32>
    %314 = vector.multi_reduction <add>, %313, %cst_86 [1] : vector<8x8xf32> to vector<8xf32>
    %315 = vector.shape_cast %314 : vector<8xf32> to vector<8x1xf32>
    %316 = vector.broadcast %315 : vector<8x1xf32> to vector<8x8xf32>
    %317 = arith.divf %313, %316 : vector<8x8xf32>
    %318 = arith.truncf %317 : vector<8x8xf32> to vector<8x8xbf16>
    %319 = arith.truncf %299 : vector<8x32xf32> to vector<8x32xbf16>
    %cst_87 = arith.constant dense<0.000000e+00> : vector<8x32xf32>
    %320 = tpu.matmul %318, %319, %cst_87 {dimension_numbers = #tpu.dot_dimension_numbers<[1], [0], [0], [1], [0, 0, 1, 1], [], []>} : vector<8x8xbf16>, vector<8x32xbf16>, vector<8x32xf32> -> vector<8x32xf32>
    %321 = vector.extract_strided_slice %132 {offsets = [8, 96], sizes = [8, 32], strides = [1, 1]} : vector<16x384xf32> to vector<8x32xf32>
    %322 = vector.extract_strided_slice %132 {offsets = [8, 224], sizes = [8, 32], strides = [1, 1]} : vector<16x384xf32> to vector<8x32xf32>
    %323 = vector.extract_strided_slice %132 {offsets = [8, 352], sizes = [8, 32], strides = [1, 1]} : vector<16x384xf32> to vector<8x32xf32>
    %324 = arith.truncf %321 : vector<8x32xf32> to vector<8x32xbf16>
    %325 = arith.truncf %322 : vector<8x32xf32> to vector<8x32xbf16>
    %cst_88 = arith.constant dense<0.000000e+00> : vector<8x8xf32>
    %326 = tpu.matmul %324, %325, %cst_88 {dimension_numbers = #tpu.dot_dimension_numbers<[1], [1], [0], [0], [0, 0, 1, 0], [], []>} : vector<8x32xbf16>, vector<8x32xbf16>, vector<8x8xf32> -> vector<8x8xf32>
    %cst_89 = arith.constant 0.176776692 : f32
    %327 = vector.broadcast %cst_89 : f32 to vector<8x8xf32>
    %328 = arith.mulf %326, %327 : vector<8x8xf32>
    %329 = vector.broadcast %248 : vector<1x8xf32> to vector<8x8xf32>
    %330 = arith.addf %328, %329 : vector<8x8xf32>
    %cst_90 = arith.constant dense<0xFF800000> : vector<8xf32>
    %331 = vector.multi_reduction <maximumf>, %330, %cst_90 [1] : vector<8x8xf32> to vector<8xf32>
    %cst_91 = arith.constant 0xFF800000 : f32
    %332 = vector.broadcast %cst_91 : f32 to vector<8xf32>
    %333 = arith.maximumf %332, %331 : vector<8xf32>
    %334 = vector.shape_cast %333 : vector<8xf32> to vector<8x1xf32>
    %335 = vector.broadcast %334 : vector<8x1xf32> to vector<8x8xf32>
    %336 = arith.subf %330, %335 : vector<8x8xf32>
    %337 = math.exp %336 : vector<8x8xf32>
    %cst_92 = arith.constant dense<0.000000e+00> : vector<8xf32>
    %338 = vector.multi_reduction <add>, %337, %cst_92 [1] : vector<8x8xf32> to vector<8xf32>
    %339 = vector.shape_cast %338 : vector<8xf32> to vector<8x1xf32>
    %340 = vector.broadcast %339 : vector<8x1xf32> to vector<8x8xf32>
    %341 = arith.divf %337, %340 : vector<8x8xf32>
    %342 = arith.truncf %341 : vector<8x8xf32> to vector<8x8xbf16>
    %343 = arith.truncf %323 : vector<8x32xf32> to vector<8x32xbf16>
    %cst_93 = arith.constant dense<0.000000e+00> : vector<8x32xf32>
    %344 = tpu.matmul %342, %343, %cst_93 {dimension_numbers = #tpu.dot_dimension_numbers<[1], [0], [0], [1], [0, 0, 1, 1], [], []>} : vector<8x8xbf16>, vector<8x32xbf16>, vector<8x32xf32> -> vector<8x32xf32>
    %345 = tpu.concatenate %272, %296, %320, %344 in 1 : vector<8x32xf32>, vector<8x32xf32>, vector<8x32xf32>, vector<8x32xf32> -> vector<8x128xf32>
    %346 = tpu.concatenate %239, %345 in 0 : vector<8x128xf32>, vector<8x128xf32> -> vector<16x128xf32>
    %c0_94 = arith.constant 0 : index
    %c0_95 = arith.constant 0 : index
    %347 = vector.load %arg10[%c0_94, %c0_95] : memref<128x128xbf16, #tpu.memory_space<vmem>>, vector<128x128xbf16>
    %348 = arith.truncf %346 : vector<16x128xf32> to vector<16x128xbf16>
    %cst_96 = arith.constant dense<0.000000e+00> : vector<16x128xf32>
    %349 = tpu.matmul %348, %347, %cst_96 {dimension_numbers = #tpu.dot_dimension_numbers<[1], [0], [0], [1], [0, 0, 1, 1], [], []>} : vector<16x128xbf16>, vector<128x128xbf16>, vector<16x128xf32> -> vector<16x128xf32>
    %350 = vector.extract_strided_slice %0 {offsets = [2, 0], sizes = [1, 128], strides = [1, 1]} : vector<16x128xf32> to vector<1x128xf32>
    %351 = vector.broadcast %350 : vector<1x128xf32> to vector<16x128xf32>
    %352 = arith.addf %349, %351 : vector<16x128xf32>
    %353 = arith.addf %126, %352 : vector<16x128xf32>
    %354 = vector.extract_strided_slice %0 {offsets = [3, 0], sizes = [1, 128], strides = [1, 1]} : vector<16x128xf32> to vector<1x128xf32>
    %355 = vector.extract_strided_slice %0 {offsets = [4, 0], sizes = [1, 128], strides = [1, 1]} : vector<16x128xf32> to vector<1x128xf32>
    %cst_97 = arith.constant dense<0.000000e+00> : vector<16xf32>
    %356 = vector.multi_reduction <add>, %353, %cst_97 [1] : vector<16x128xf32> to vector<16xf32>
    %357 = vector.shape_cast %356 : vector<16xf32> to vector<16x1xf32>
    %cst_98 = arith.constant 1.280000e+02 : f32
    %358 = vector.broadcast %cst_98 : f32 to vector<16x1xf32>
    %359 = arith.divf %357, %358 : vector<16x1xf32>
    %360 = vector.broadcast %359 : vector<16x1xf32> to vector<16x128xf32>
    %361 = arith.subf %353, %360 : vector<16x128xf32>
    %362 = arith.mulf %361, %361 : vector<16x128xf32>
    %cst_99 = arith.constant dense<0.000000e+00> : vector<16xf32>
    %363 = vector.multi_reduction <add>, %362, %cst_99 [1] : vector<16x128xf32> to vector<16xf32>
    %364 = vector.shape_cast %363 : vector<16xf32> to vector<16x1xf32>
    %cst_100 = arith.constant 1.280000e+02 : f32
    %365 = vector.broadcast %cst_100 : f32 to vector<16x1xf32>
    %366 = arith.divf %364, %365 : vector<16x1xf32>
    %367 = vector.broadcast %359 : vector<16x1xf32> to vector<16x128xf32>
    %368 = arith.subf %353, %367 : vector<16x128xf32>
    %cst_101 = arith.constant 9.99999996E-13 : f32
    %369 = vector.broadcast %cst_101 : f32 to vector<16x1xf32>
    %370 = arith.addf %366, %369 : vector<16x1xf32>
    %371 = math.rsqrt %370 : vector<16x1xf32>
    %372 = vector.broadcast %371 : vector<16x1xf32> to vector<16x128xf32>
    %373 = arith.mulf %368, %372 : vector<16x128xf32>
    %374 = vector.broadcast %354 : vector<1x128xf32> to vector<16x128xf32>
    %375 = arith.mulf %373, %374 : vector<16x128xf32>
    %376 = vector.broadcast %355 : vector<1x128xf32> to vector<16x128xf32>
    %377 = arith.addf %375, %376 : vector<16x128xf32>
    %c0_102 = arith.constant 0 : index
    %c0_103 = arith.constant 0 : index
    %378 = vector.load %arg11[%c0_102, %c0_103] : memref<128x256xbf16, #tpu.memory_space<vmem>>, vector<128x256xbf16>
    %379 = arith.truncf %377 : vector<16x128xf32> to vector<16x128xbf16>
    %cst_104 = arith.constant dense<0.000000e+00> : vector<16x256xf32>
    %380 = tpu.matmul %379, %378, %cst_104 {dimension_numbers = #tpu.dot_dimension_numbers<[1], [0], [0], [1], [0, 0, 1, 1], [], []>} : vector<16x128xbf16>, vector<128x256xbf16>, vector<16x256xf32> -> vector<16x256xf32>
    %c0_105 = arith.constant 0 : index
    %c0_106 = arith.constant 0 : index
    %381 = vector.load %arg7[%c0_105, %c0_106] : memref<1x256xf32, #tpu.memory_space<vmem>>, vector<1x256xf32>
    %382 = vector.broadcast %381 : vector<1x256xf32> to vector<16x256xf32>
    %383 = arith.addf %380, %382 : vector<16x256xf32>
    %384 = arith.mulf %383, %383 : vector<16x256xf32>
    %385 = arith.mulf %383, %384 : vector<16x256xf32>
    %cst_107 = arith.constant 4.471500e-02 : f32
    %386 = vector.broadcast %cst_107 : f32 to vector<16x256xf32>
    %387 = arith.mulf %386, %385 : vector<16x256xf32>
    %388 = arith.addf %383, %387 : vector<16x256xf32>
    %cst_108 = arith.constant 0.797884583 : f32
    %389 = vector.broadcast %cst_108 : f32 to vector<16x256xf32>
    %390 = arith.mulf %389, %388 : vector<16x256xf32>
    %391 = math.tanh %390 : vector<16x256xf32>
    %cst_109 = arith.constant 1.000000e+00 : f32
    %392 = vector.broadcast %cst_109 : f32 to vector<16x256xf32>
    %393 = arith.addf %392, %391 : vector<16x256xf32>
    %cst_110 = arith.constant 5.000000e-01 : f32
    %394 = vector.broadcast %cst_110 : f32 to vector<16x256xf32>
    %395 = arith.mulf %394, %393 : vector<16x256xf32>
    %396 = arith.mulf %383, %395 : vector<16x256xf32>
    %c0_111 = arith.constant 0 : index
    %c0_112 = arith.constant 0 : index
    %397 = vector.load %arg12[%c0_111, %c0_112] : memref<256x128xbf16, #tpu.memory_space<vmem>>, vector<256x128xbf16>
    %398 = arith.truncf %396 : vector<16x256xf32> to vector<16x256xbf16>
    %cst_113 = arith.constant dense<0.000000e+00> : vector<16x128xf32>
    %399 = tpu.matmul %398, %397, %cst_113 {dimension_numbers = #tpu.dot_dimension_numbers<[1], [0], [0], [1], [0, 0, 1, 1], [], []>} : vector<16x256xbf16>, vector<256x128xbf16>, vector<16x128xf32> -> vector<16x128xf32>
    %400 = vector.extract_strided_slice %0 {offsets = [5, 0], sizes = [1, 128], strides = [1, 1]} : vector<16x128xf32> to vector<1x128xf32>
    %401 = vector.broadcast %400 : vector<1x128xf32> to vector<16x128xf32>
    %402 = arith.addf %399, %401 : vector<16x128xf32>
    %403 = arith.addf %377, %402 : vector<16x128xf32>
    %404 = vector.extract_strided_slice %0 {offsets = [6, 0], sizes = [1, 128], strides = [1, 1]} : vector<16x128xf32> to vector<1x128xf32>
    %405 = vector.extract_strided_slice %0 {offsets = [7, 0], sizes = [1, 128], strides = [1, 1]} : vector<16x128xf32> to vector<1x128xf32>
    %cst_114 = arith.constant dense<0.000000e+00> : vector<16xf32>
    %406 = vector.multi_reduction <add>, %403, %cst_114 [1] : vector<16x128xf32> to vector<16xf32>
    %407 = vector.shape_cast %406 : vector<16xf32> to vector<16x1xf32>
    %cst_115 = arith.constant 1.280000e+02 : f32
    %408 = vector.broadcast %cst_115 : f32 to vector<16x1xf32>
    %409 = arith.divf %407, %408 : vector<16x1xf32>
    %410 = vector.broadcast %409 : vector<16x1xf32> to vector<16x128xf32>
    %411 = arith.subf %403, %410 : vector<16x128xf32>
    %412 = arith.mulf %411, %411 : vector<16x128xf32>
    %cst_116 = arith.constant dense<0.000000e+00> : vector<16xf32>
    %413 = vector.multi_reduction <add>, %412, %cst_116 [1] : vector<16x128xf32> to vector<16xf32>
    %414 = vector.shape_cast %413 : vector<16xf32> to vector<16x1xf32>
    %cst_117 = arith.constant 1.280000e+02 : f32
    %415 = vector.broadcast %cst_117 : f32 to vector<16x1xf32>
    %416 = arith.divf %414, %415 : vector<16x1xf32>
    %417 = vector.broadcast %409 : vector<16x1xf32> to vector<16x128xf32>
    %418 = arith.subf %403, %417 : vector<16x128xf32>
    %cst_118 = arith.constant 9.99999996E-13 : f32
    %419 = vector.broadcast %cst_118 : f32 to vector<16x1xf32>
    %420 = arith.addf %416, %419 : vector<16x1xf32>
    %421 = math.rsqrt %420 : vector<16x1xf32>
    %422 = vector.broadcast %421 : vector<16x1xf32> to vector<16x128xf32>
    %423 = arith.mulf %418, %422 : vector<16x128xf32>
    %424 = vector.broadcast %404 : vector<1x128xf32> to vector<16x128xf32>
    %425 = arith.mulf %423, %424 : vector<16x128xf32>
    %426 = vector.broadcast %405 : vector<1x128xf32> to vector<16x128xf32>
    %427 = arith.addf %425, %426 : vector<16x128xf32>
    %c0_119 = arith.constant 0 : index
    %c0_120 = arith.constant 0 : index
    %428 = vector.load %arg15[%c0_119, %c0_120] : memref<16x128xf32, #tpu.memory_space<vmem>>, vector<16x128xf32>
    tpu.vector_store %arg15[%c0_119, %c0_120], %427 {strides = array<i32>} : memref<16x128xf32, #tpu.memory_space<vmem>>, vector<16x128xf32>,
    %429 = vector.extract_strided_slice %427 {offsets = [8, 0], sizes = [1, 128], strides = [1, 1]} : vector<16x128xf32> to vector<1x128xf32>
    %c0_121 = arith.constant 0 : index
    %c0_122 = arith.constant 0 : index
    %430 = vector.load %arg13[%c0_121, %c0_122] : memref<128x128xbf16, #tpu.memory_space<vmem>>, vector<128x128xbf16>
    %431 = arith.truncf %429 : vector<1x128xf32> to vector<1x128xbf16>
    %cst_123 = arith.constant dense<0.000000e+00> : vector<1x128xf32>
    %432 = tpu.matmul %431, %430, %cst_123 {dimension_numbers = #tpu.dot_dimension_numbers<[1], [0], [0], [1], [0, 0, 1, 1], [], []>} : vector<1x128xbf16>, vector<128x128xbf16>, vector<1x128xf32> -> vector<1x128xf32>
    %433 = vector.extract_strided_slice %0 {offsets = [8, 0], sizes = [1, 128], strides = [1, 1]} : vector<16x128xf32> to vector<1x128xf32>
    %434 = arith.addf %432, %433 : vector<1x128xf32>
    %435 = math.tanh %434 : vector<1x128xf32>
    %c0_124 = arith.constant 0 : index
    %c0_125 = arith.constant 0 : index
    %436 = vector.load %arg14[%c0_124, %c0_125] : memref<128x128xbf16, #tpu.memory_space<vmem>>, vector<128x128xbf16>
    %437 = arith.truncf %435 : vector<1x128xf32> to vector<1x128xbf16>
    %cst_126 = arith.constant dense<0.000000e+00> : vector<1x128xf32>
    %438 = tpu.matmul %437, %436, %cst_126 {dimension_numbers = #tpu.dot_dimension_numbers<[1], [0], [0], [1], [0, 0, 1, 1], [], []>} : vector<1x128xbf16>, vector<128x128xbf16>, vector<1x128xf32> -> vector<1x128xf32>
    %c0_127 = arith.constant 0 : index
    %c0_128 = arith.constant 0 : index
    %439 = vector.load %arg8[%c0_127, %c0_128] : memref<1x128xf32, #tpu.memory_space<vmem>>, vector<1x128xf32>
    %440 = arith.addf %438, %439 : vector<1x128xf32>
    %441 = vector.shape_cast %440 : vector<1x128xf32> to vector<1x128xf32>
    %442 = vector.broadcast %441 : vector<1x128xf32> to vector<8x128xf32>
    %c0_129 = arith.constant 0 : index
    %c0_130 = arith.constant 0 : index
    %443 = vector.load %arg16[%c0_129, %c0_130] : memref<8x128xf32, #tpu.memory_space<vmem>>, vector<8x128xf32>
    tpu.vector_store %arg16[%c0_129, %c0_130], %442 {strides = array<i32>} : memref<8x128xf32, #tpu.memory_space<vmem>>, vector<8x128xf32>,
    return
  }
  func.func @transform_0(%arg0: i32, %arg1: memref<2x8xi32, #tpu.memory_space<smem>>, %arg2: memref<2xi32, #tpu.memory_space<smem>>) -> (i32, i32) {
    %c0_i32 = arith.constant 0 : i32
    %c0_i32_0 = arith.constant 0 : i32
    %c0_i32_1 = arith.constant 0 : i32
    return %c0_i32, %c0_i32_0 : i32, i32
  }
  func.func @transform_1(%arg0: i32, %arg1: memref<2x8xi32, #tpu.memory_space<smem>>, %arg2: memref<2xi32, #tpu.memory_space<smem>>) -> (i32, i32) {
    %c0_i32 = arith.constant 0 : i32
    %c0_i32_0 = arith.constant 0 : i32
    %c0_i32_1 = arith.constant 0 : i32
    return %c0_i32, %c0_i32_0 : i32, i32
  }
  func.func @transform_2(%arg0: i32, %arg1: memref<2x8xi32, #tpu.memory_space<smem>>, %arg2: memref<2xi32, #tpu.memory_space<smem>>) -> (i32, i32) {
    %c0_i32 = arith.constant 0 : i32
    %c0_i32_0 = arith.constant 0 : i32
    %c0_i32_1 = arith.constant 0 : i32
    return %c0_i32, %c0_i32_0 : i32, i32
  }
  func.func @transform_3(%arg0: i32, %arg1: memref<2x8xi32, #tpu.memory_space<smem>>, %arg2: memref<2xi32, #tpu.memory_space<smem>>) -> (i32, i32) {
    %c0_i32 = arith.constant 0 : i32
    %c0_i32_0 = arith.constant 0 : i32
    %c0_i32_1 = arith.constant 0 : i32
    return %c0_i32, %c0_i32_0 : i32, i32
  }
  func.func @transform_4(%arg0: i32, %arg1: memref<2x8xi32, #tpu.memory_space<smem>>, %arg2: memref<2xi32, #tpu.memory_space<smem>>) -> (i32, i32) {
    %c0_i32 = arith.constant 0 : i32
    %c0_i32_0 = arith.constant 0 : i32
    %c0_i32_1 = arith.constant 0 : i32
    return %c0_i32, %c0_i32_0 : i32, i32
  }
  func.func @transform_5(%arg0: i32, %arg1: memref<2x8xi32, #tpu.memory_space<smem>>, %arg2: memref<2xi32, #tpu.memory_space<smem>>) -> (i32, i32) {
    %c0_i32 = arith.constant 0 : i32
    %c0_i32_0 = arith.constant 0 : i32
    %c0_i32_1 = arith.constant 0 : i32
    return %c0_i32, %c0_i32_0 : i32, i32
  }
  func.func @transform_6(%arg0: i32, %arg1: memref<2x8xi32, #tpu.memory_space<smem>>, %arg2: memref<2xi32, #tpu.memory_space<smem>>) -> (i32, i32) {
    %c0_i32 = arith.constant 0 : i32
    %c0_i32_0 = arith.constant 0 : i32
    %c0_i32_1 = arith.constant 0 : i32
    return %c0_i32, %c0_i32_0 : i32, i32
  }
  func.func @transform_7(%arg0: i32, %arg1: memref<2x8xi32, #tpu.memory_space<smem>>, %arg2: memref<2xi32, #tpu.memory_space<smem>>) -> (i32, i32) {
    %c0_i32 = arith.constant 0 : i32
    %c0_i32_0 = arith.constant 0 : i32
    %c0_i32_1 = arith.constant 0 : i32
    return %c0_i32, %c0_i32_0 : i32, i32
  }
  func.func @transform_8(%arg0: i32, %arg1: memref<2x8xi32, #tpu.memory_space<smem>>, %arg2: memref<2xi32, #tpu.memory_space<smem>>) -> (i32, i32) {
    %c0_i32 = arith.constant 0 : i32
    %c0_i32_0 = arith.constant 0 : i32
    %c0_i32_1 = arith.constant 0 : i32
    return %c0_i32, %c0_i32_0 : i32, i32
  }
  func.func @transform_9(%arg0: i32, %arg1: memref<2x8xi32, #tpu.memory_space<smem>>, %arg2: memref<2xi32, #tpu.memory_space<smem>>) -> (i32, i32) {
    %c0_i32 = arith.constant 0 : i32
    %c0_i32_0 = arith.constant 0 : i32
    %c0_i32_1 = arith.constant 0 : i32
    return %c0_i32, %c0_i32_0 : i32, i32
  }
  func.func @transform_10(%arg0: i32, %arg1: memref<2x8xi32, #tpu.memory_space<smem>>, %arg2: memref<2xi32, #tpu.memory_space<smem>>) -> (i32, i32) {
    %c0_i32 = arith.constant 0 : i32
    %c0_i32_0 = arith.constant 0 : i32
    %c0_i32_1 = arith.constant 0 : i32
    return %c0_i32, %c0_i32_0 : i32, i32
  }
  func.func @transform_11(%arg0: i32, %arg1: memref<2x8xi32, #tpu.memory_space<smem>>, %arg2: memref<2xi32, #tpu.memory_space<smem>>) -> (i32, i32) {
    %c0_i32 = arith.constant 0 : i32
    %c0_i32_0 = arith.constant 0 : i32
    %c0_i32_1 = arith.constant 0 : i32
    return %c0_i32, %c0_i32_0 : i32, i32
  }
  func.func @transform_12(%arg0: i32, %arg1: memref<2x8xi32, #tpu.memory_space<smem>>, %arg2: memref<2xi32, #tpu.memory_space<smem>>) -> (i32, i32) {
    %c0_i32 = arith.constant 0 : i32
    %c0_i32_0 = arith.constant 0 : i32
    return %arg0, %c0_i32 : i32, i32
  }
  func.func @transform_13(%arg0: i32, %arg1: memref<2x8xi32, #tpu.memory_space<smem>>, %arg2: memref<2xi32, #tpu.memory_space<smem>>) -> (i32, i32) {
    %c0_i32 = arith.constant 0 : i32
    %c0_i32_0 = arith.constant 0 : i32
    return %arg0, %c0_i32 : i32, i32
  }
}

</mosaic_0001>

<bundles_post_ra>
// kernel: sentiment_net_forward.1
= control target key start
LH: loop header
LB: loop body
LE: loop exit
PB: predicated region body
PF: predicated region fallthrough
CT: control target
= control target key end

     0   :  { %s2828_s24 = smov [#allocation3]   ;;  %s2829_s25 = smov [#allocation4]   ;;  %s3338_s0 = inlined_call_operand.vmem [shape: s32[2,8], index: 0, kind: input, shape index: {}]   ;;  %s3339_s2 = inlined_call_operand.hbm [shape: f32[104,128], index: 2, kind: input, shape index: {}]   ;;  %s3340_s3 = inlined_call_operand.hbm [shape: f32[64,128], index: 3, kind: input, shape index: {}]   ;;  %s3341_s4 = inlined_call_operand.hbm [shape: f32[16,128], index: 4, kind: input, shape index: {}]   ;;  %s3342_s5 = inlined_call_operand.vmem [shape: f32[1,384], index: 5, kind: input, shape index: {}]   ;;  %s3343_s6 = inlined_call_operand.hbm [shape: f32[1,256], index: 6, kind: input, shape index: {}]   ;;  %s3344_s7 = inlined_call_operand.hbm [shape: f32[1,128], index: 7, kind: input, shape index: {}]   ;;  %s3345_s8 = inlined_call_operand.hbm [shape: bf16[128,384], index: 8, kind: input, shape index: {}]   ;;  %s3346_s9 = inlined_call_operand.hbm [shape: bf16[128,128], index: 9, kind: input, shape index: {}]   ;;  %s3347_s10 = inlined_call_operand.hbm [shape: bf16[128,256], index: 10, kind: input, shape index: {}]   ;;  %s3348_s11 = inlined_call_operand.hbm [shape: bf16[256,128], index: 11, kind: input, shape index: {}]   ;;  %s3349_s12 = inlined_call_operand.hbm [shape: bf16[128,128], index: 12, kind: input, shape index: {}]   ;;  %s3350_s13 = inlined_call_operand.hbm [shape: bf16[128,128], index: 13, kind: input, shape index: {}]   ;;  %s3351_s14 = inlined_call_operand.hbm [shape: f32[16,128], index: 14, kind: output, shape index: {0}]   ;;  %s3352_s15 = inlined_call_operand.vmem [shape: f32[8,128], index: 15, kind: output, shape index: {1}]   ;;  %s3353_s1 = inlined_call_operand.vmem [shape: s32[2], index: 1, kind: input, shape index: {}]  }
   0x1   :  { %s22_s20 = sshll.u32 %s3338_s0, 4  ;;  %s27_s23 = sshll.u32 %s3353_s1, 4  ;;  %s23_s20 = int_to_ptr.vmem [resolvable:$true] %s22_s20  ;;  %s28_s23 = int_to_ptr.vmem [resolvable:$true] %s27_s23 }
   0x2   :  { %25 = dma.vmem_to_smem %s23_s20, 32, %s2828_s24, [#allocation2] }
   0x3   :  { %30 = dma.vmem_to_smem %s28_s23, 16, %s2829_s25, [#allocation2] }
   0x4   :  { %2812 = dma.done.wait [#allocation2], 48 }
   0x5   :  { %2813 = vsyncadd [#allocation2], 4294967248 }
   0x6   :  { %33 = sfence }
   0x7   :  { %34 = vsyncpa [#allocation6], 0 }
   0x8   :  { %35 = vsyncpa [#allocation9], 0 }
   0x9   :  { %36 = vsyncpa [#allocation12], 0 }
   0xa   :  { %37 = vsyncpa [#allocation15], 0 }
   0xb   :  { %38 = vsyncpa [#allocation18], 0 }
   0xc   :  { %39 = vsyncpa [#allocation21], 0  ;;  %s59_s27 = sshll.u32 %s3340_s3, 4  ;;  %s60_s27 = int_to_ptr.hbm [resolvable:$true] %s59_s27 }
   0xd   :  { %40 = vsyncpa [#allocation7], 0  ;;  %s2830_s1 = smov [#allocation8]   ;;  %s85_s16 = sshll.u32 %s3343_s6, 4  ;;  %s86_s16 = int_to_ptr.hbm [resolvable:$true] %s85_s16 }
   0xe   :  { %s61_s28 = sshll.u32 %s2830_s1, 4  ;;  %s2831_s17 = smov [#allocation11]   ;;  %s62_s28 = int_to_ptr.vmem [resolvable:$true] %s61_s28 }
   0xf   :  { %64 = dma.hbm_to_vmem [thread:$0]  %s60_s27, 128, %s62_s28, [#allocation9]  }
  0x10   :  { %s87_s18 = sshll.u32 %s2831_s17, 4  ;;  %s106_s21 = sshll.u32 %s3345_s8, 4  ;;  %s88_s18 = int_to_ptr.vmem [resolvable:$true] %s87_s18  ;;  %s107_s21 = int_to_ptr.hbm [resolvable:$true] %s106_s21 }
  0x11   :  { %90 = dma.hbm_to_vmem [thread:$0]  %s86_s16, 32, %s88_s18, [#allocation12]  }
  0x12   :  { %s2832_s3 = smov [#allocation14]   ;;  %s2833_s23 = smov 192  }
  0x13   :  { %s108_s22 = sshll.u32 %s2832_s3, 4  ;;  %s2834_s24 = smov 12   ;;  %s109_s22 = int_to_ptr.vmem [resolvable:$true] %s108_s22 }
  0x14   :  { %114 = dma.hbm_to_vmem [thread:$0]  %s107_s21, 3072, %s109_s22, [#allocation15], %s2833_s23, %s2833_s23, %s2834_s24  }
  0x15   :  { %s132_s6 = sshll.u32 %s3347_s10, 4  ;;  %s2835_s26 = smov [#allocation17]   ;;  %s133_s6 = int_to_ptr.hbm [resolvable:$true] %s132_s6 }
  0x16   :  { %s134_s27 = sshll.u32 %s2835_s26, 4  ;;  %s2836_s1 = smov 128   ;;  %s135_s27 = int_to_ptr.vmem [resolvable:$true] %s134_s27 }
  0x17   :  { %s2837_s28 = smov 8   ;;  %s158_s30 = sshll.u32 %s3349_s12, 4  ;;  %s159_s30 = int_to_ptr.hbm [resolvable:$true] %s158_s30 }
  0x18   :  { %140 = dma.hbm_to_vmem [thread:$0]  %s133_s6, 2048, %s135_s27, [#allocation18], %s2836_s1, %s2836_s1, %s2837_s28  }
  0x19   :  { %s2838_s16 = smov [#allocation20]   ;;  %s45_s19 = sshll.u32 %s3339_s2, 4  ;;  %s46_s19 = int_to_ptr.hbm [resolvable:$true] %s45_s19 }
  0x1a   :  { %s160_s17 = sshll.u32 %s2838_s16, 4  ;;  %s2839_s20 = smov 64   ;;  %s161_s17 = int_to_ptr.vmem [resolvable:$true] %s160_s17 }
  0x1b   :  { %s2840_s21 = smov 4   ;;  %s2841_s3 = smov [#allocation5]  }
  0x1c   :  { %166 = dma.hbm_to_vmem [thread:$0]  %s159_s30, 1024, %s161_s17, [#allocation21], %s2839_s20, %s2839_s20, %s2840_s21  }
  0x1d   :  { %s47_s22 = sshll.u32 %s2841_s3, 4  ;;  %s69_s12 = sshll.u32 %s3341_s4, 4  ;;  %s48_s22 = int_to_ptr.vmem [resolvable:$true] %s47_s22  ;;  %s70_s12 = int_to_ptr.hbm [resolvable:$true] %s69_s12 }
  0x1e   :  { %53 = dma.hbm_to_vmem [thread:$0]  %s46_s19, 1664, %s48_s22, [#allocation6], %s2836_s1, %s2836_s1, %s2837_s28  }
  0x1f   :  { %s96_s0 = sshll.u32 %s3344_s7, 4  ;;  %s2842_s6 = smov [#allocation10]   ;;  %s97_s0 = int_to_ptr.hbm [resolvable:$true] %s96_s0 }
  0x20   :  { %s71_s26 = sshll.u32 %s2842_s6, 4  ;;  %s2843_s27 = smov [#allocation13]   ;;  %s72_s26 = int_to_ptr.vmem [resolvable:$true] %s71_s26 }
  0x21   :  { %77 = dma.hbm_to_vmem [thread:$0]  %s70_s12, 256, %s72_s26, [#allocation9], %s2836_s1, %s2836_s1, %s2837_s28  }
  0x22   :  { %s98_s4 = sshll.u32 %s2843_s27, 4  ;;  %s119_s30 = sshll.u32 %s3346_s9, 4  ;;  %s99_s4 = int_to_ptr.vmem [resolvable:$true] %s98_s4  ;;  %s120_s30 = int_to_ptr.hbm [resolvable:$true] %s119_s30 }
  0x23   :  { %101 = dma.hbm_to_vmem [thread:$0]  %s97_s0, 16, %s99_s4, [#allocation12]  }
  0x24   :  { %s145_s7 = sshll.u32 %s3348_s11, 4  ;;  %s2844_s18 = smov [#allocation16]   ;;  %s146_s7 = int_to_ptr.hbm [resolvable:$true] %s145_s7 }
  0x25   :  { %s121_s10 = sshll.u32 %s2844_s18, 4  ;;  %s2845_s19 = smov [#allocation19]   ;;  %s122_s10 = int_to_ptr.vmem [resolvable:$true] %s121_s10 }
  0x26   :  { %127 = dma.hbm_to_vmem [thread:$0]  %s120_s30, 1024, %s122_s10, [#allocation15], %s2839_s20, %s2839_s20, %s2840_s21  }
  0x27   :  { %s147_s3 = sshll.u32 %s2845_s19, 4  ;;  %s171_s9 = sshll.u32 %s3350_s13, 4  ;;  %s148_s3 = int_to_ptr.vmem [resolvable:$true] %s147_s3  ;;  %s172_s9 = int_to_ptr.hbm [resolvable:$true] %s171_s9 }
  0x28   :  { %153 = dma.hbm_to_vmem [thread:$0]  %s146_s7, 2048, %s148_s3, [#allocation18], %s2839_s20, %s2839_s20, %s2840_s21  }
  0x29   :  { %s2846_s11 = smov [#allocation22]  }
  0x2a   :  { %s173_s24 = sshll.u32 %s2846_s11, 4  ;;  %s174_s24 = int_to_ptr.vmem [resolvable:$true] %s173_s24 }
  0x2b   :  { %179 = dma.hbm_to_vmem [thread:$0]  %s172_s9, 1024, %s174_s24, [#allocation21], %s2839_s20, %s2839_s20, %s2840_s21  }
  0x2c   :  { %2814 = dma.done.wait [#allocation6], 1664  }
  0x2d   :  { %2815 = vsyncadd [#allocation6], 4294965632 }
  0x2e   :  { %2816 = dma.done.wait [#allocation9], 384  }
  0x2f   :  { %2817 = vsyncadd [#allocation9], 4294966912 }
  0x30   :  { %2818 = dma.done.wait [#allocation12], 48  }
  0x31   :  { %2819 = vsyncadd [#allocation12], 4294967248 }
  0x32   :  { %2820 = dma.done.wait [#allocation15], 4096  }
  0x33   :  { %2821 = vsyncadd [#allocation15], 4294963200 }
  0x34   :  { %2822 = dma.done.wait [#allocation18], 4096  }
  0x35   :  { %2823 = vsyncadd [#allocation18], 4294963200 }
  0x36   :  { %2824 = dma.done.wait [#allocation21], 2048  }
  0x37   :  { %2825 = vsyncadd [#allocation21], 4294965248  ;;  %s230_s13 = sld [smem:[#allocation3]]  ;;  %v2996_v0 = vld [vmem:[#allocation8] sm:$0xff]  ;;  %vm367_vm0 = vcmask 1040384   ;;  %vm369_vm1 = vcmask 1041408  }
  0x38   :  { %s1972_s12 = sld [smem:[#allocation3 + $0x1]]  ;;  %v239_v2 = vrot.slane %v2996_v0, 1  ;;  %v246_v3 = vrot.slane %v2996_v0, 2  ;;  %v253_v4 = vrot.slane %v2996_v0, 3  ;;  %v260_v6 = vrot.slane %v2996_v0, 4 }
  0x39   :  { %s1973_s2 = sld [smem:[#allocation3 + $0x2]]  ;;  %vm371_vm2 = vcmask 1042432   ;;  %vm373_vm3 = vcmask 1043456   ;;  %v267_v10 = vrot.slane %v2996_v0, 5  ;;  %v274_v13 = vrot.slane %v2996_v0, 6 }
  0x3a   :  { %s1974_s25 = sld [smem:[#allocation3 + $0x3]]  ;;  %v281_v22 = vrot.slane %v2996_v0, 7  ;;  %vm375_vm4 = vcmask 1044480   ;;  %vm377_vm5 = vcmask 1045504   ;;  %vm379_vm6 = vcmask 1046528  }
  0x3b   :  { %s2992_s0 = sld [smem:[#allocation3 + $0x4]]  ;;  %vm660_vm14 = vcmask 261120  }
  0x3c   :  { %s2994_s6 = sld [smem:[#allocation3 + $0x5]] }
  0x3d   :  { %s2998_s21 = sld [smem:[#allocation3 + $0x6]]  ;;  %s231_s26 = scalar_lea.vmem [#allocation5], %s230_s13 }
  0x3e   :  { %v232_v1 = vld [vmem:[%s231_s26] sm:$0x1]  ;;  %s236_s27 = scalar_lea.vmem [#allocation5], %s1972_s12  ;;  %s3006_s8 = sld [smem:[#allocation3 + $0x7]] }
  0x3f   :  { %v237_v5 = vld [vmem:[%s236_s27] sm:$0x1]  ;;  %v233_v7 = vadd.f32 %v232_v1, %v2996_v0  ;;  %s244_s4 = scalar_lea.vmem [#allocation5], %s1973_s2  ;;  %s3011_s30 = sld [smem:[#allocation3 + $0x80]] }
  0x40   :  { %v241_v8 = vadd.f32 %v239_v2, %v237_v5  ;;  %v245_v9 = vld [vmem:[%s244_s4] sm:$0x1]  ;;  %s251_s29 = scalar_lea.vmem [#allocation5], %s1974_s25  ;;  %s3016_s17 = sld [smem:[#allocation3 + $0x81]] }
  0x41   :  { %v248_v11 = vadd.f32 %v246_v3, %v245_v9  ;;  %v252_v12 = vld [vmem:[%s251_s29] sm:$0x1]  ;;  %s258_s16 = scalar_lea.vmem [#allocation5], %s2992_s0  ;;  %s3021_s18 = sld [smem:[#allocation3 + $0x82]] }
  0x42   :  { %v255_v14 = vadd.f32 %v253_v4, %v252_v12  ;;  %v259_v15 = vld [vmem:[%s258_s16] sm:$0x1]  ;;  %v326_v16 = vrot.slane %v241_v8, 7  ;;  %s265_s7 = scalar_lea.vmem [#allocation5], %s2994_s6  ;;  %s3028_s19 = sld [smem:[#allocation3 + $0x83]] }
  0x43   :  { %v262_v17 = vadd.f32 %v260_v6, %v259_v15  ;;  %v266_v18 = vld [vmem:[%s265_s7] sm:$0x1]  ;;  %v329_v19 = vrot.slane %v248_v11, 6  ;;  %s272_s10 = scalar_lea.vmem [#allocation5], %s2998_s21  ;;  %s3033_s3 = sld [smem:[#allocation3 + $0x84]] }
  0x44   :  { %v269_v20 = vadd.f32 %v267_v10, %v266_v18  ;;  %v273_v21 = vld [vmem:[%s272_s10] sm:$0x1]  ;;  %v332_v23 = vrot.slane %v255_v14, 5  ;;  %v368_v24 = vsel %vm367_vm0, %v233_v7, %v326_v16  ;;  %s3036_s22 = sld [smem:[#allocation3 + $0x85]]  ;;  %s279_s23 = scalar_lea.vmem [#allocation5], %s3006_s8 }
  0x45   :  { %v276_v25 = vadd.f32 %v274_v13, %v273_v21  ;;  %v335_v26 = vrot.slane %v262_v17, 4  ;;  %v370_v27 = vsel %vm369_vm1, %v368_v24, %v329_v19  ;;  %v280_v30 = vld [vmem:[%s279_s23] sm:$0x1]  ;;  %s3040_s9 = sld [smem:[#allocation3 + $0x86]]  ;;  %s287_s11 = scalar_lea.vmem [#allocation5], %s3011_s30 }
  0x46   :  { %v338_v28 = vrot.slane %v269_v20, 3  ;;  %v372_v29 = vsel %vm371_vm2, %v370_v27, %v332_v23  ;;  %v283_v33 = vadd.f32 %v281_v22, %v280_v30  ;;  %v288_v35 = vld [vmem:[%s287_s11] sm:$0x1]  ;;  %s3044_s24 = sld [smem:[#allocation3 + $0x87]]  ;;  %s292_s13 = scalar_lea.vmem [#allocation5], %s3016_s17 }
  0x47   :  { %v341_v31 = vrot.slane %v276_v25, 2  ;;  %v374_v32 = vsel %vm373_vm3, %v372_v29, %v335_v26  ;;  %v293_v37 = vld [vmem:[%s292_s13] sm:$0x1]  ;;  %v289_v39 = vadd.f32 %v288_v35, %v2996_v0  ;;  %s297_s12 = scalar_lea.vmem [#allocation5], %s3021_s18  ;;  %v2073_v19 = vld [vmem:[#allocation14 + $0xa8] sm:$0xf] }
  0x48   :  { %v376_v34 = vsel %vm375_vm4, %v374_v32, %v338_v28  ;;  %v344_v38 = vrot.slane %v283_v33, 1  ;;  %v294_v40 = vadd.f32 %v293_v37, %v239_v2  ;;  %v298_v41 = vld [vmem:[%s297_s12] sm:$0x1]  ;;  %s302_s2 = scalar_lea.vmem [#allocation5], %s3028_s19  ;;  %v2346_v20 = vld [vmem:[#allocation14 + $0xb0] sm:$0xf0] }
  0x49   :  { %v378_v36 = vsel %vm377_vm5, %v376_v34, %v341_v31  ;;  %v299_v42 = vadd.f32 %v298_v41, %v246_v3  ;;  %v303_v43 = vld [vmem:[%s302_s2] sm:$0x1]  ;;  %s307_s25 = scalar_lea.vmem [#allocation5], %s3033_s3  ;;  %v2345_v21 = vld [vmem:[#allocation14 + $0xac] sm:$0xf]  ;;  %s2848_s4 = smov 96  }
  0x4a   :  { %v380_v44 = vsel %vm379_vm6, %v378_v36, %v344_v38  ;;  %v304_v45 = vadd.f32 %v303_v43, %v253_v4  ;;  %v308_v46 = vld [vmem:[%s307_s25] sm:$0x1]  ;;  %v347_v47 = vrot.slane %v294_v40, 7  ;;  %s312_s0 = scalar_lea.vmem [#allocation5], %s3036_s22  ;;  %v2847_v4 = vmov 128.0   ;;  %s654_s8 = sld [smem:[#allocation4]] }
  0x4b   :  { %388 = vadd.xlane.f32.xlu0 %v380_v44  ;;  %v309_v48 = vadd.f32 %v308_v46, %v260_v6  ;;  %v313_v49 = vld [vmem:[%s312_s0] sm:$0x1]  ;;  %v350_v50 = vrot.slane %v299_v42, 6  ;;  %s317_s6 = scalar_lea.vmem [#allocation5], %s3040_s9  ;;  %2443 = vrcp.f32 %v2847_v4  ;;  %v2075_v23 = vld [vmem:[#allocation14 + $0xb4] sm:$0xf0] }
  0x4c   :  { %v314_v51 = vadd.f32 %v313_v49, %v267_v10  ;;  %v318_v52 = vld [vmem:[%s317_s6] sm:$0x1]  ;;  %v353_v53 = vrot.slane %v304_v45, 5  ;;  %v381_v54 = vsel %vm367_vm0, %v289_v39, %v347_v47  ;;  %s322_s21 = scalar_lea.vmem [#allocation5], %s3044_s24  ;;  %v2081_v24 = vld [vmem:[#allocation14 + $0xb0] sm:$0xf]  ;;  %v2078_v26 = vor.u32 %v2345_v21, %v2075_v23 }
  0x4d   :  { %v319_v55 = vadd.f32 %v318_v52, %v274_v13  ;;  %v323_v56 = vld [vmem:[%s322_s21] sm:$0x1]  ;;  %v356_v57 = vrot.slane %v309_v48, 4  ;;  %v382_v58 = vsel %vm369_vm1, %v381_v54, %v350_v50  ;;  %v2061_v28 = vld [vmem:[#allocation14 + $0x90] sm:$0xf]  ;;  %vm682_vm0 = vcmask 64512  }
  0x4e   :  { %v324_v59 = vadd.f32 %v323_v56, %v281_v22  ;;  %v359_v60 = vrot.slane %v314_v51, 3  ;;  %v383_v61 = vsel %vm371_vm2, %v382_v58, %v353_v53  ;;  %v2074_v22 = vor.u32 %v2346_v20, %v2073_v19  ;;  %v2347_v25 = vld [vmem:[#allocation14 + $0xb8] sm:$0xf0]  ;;  %624 = vmatpush.bf16.msra.mxu1 %v2078_v26  ;;  %v2342_v30 = vld [vmem:[#allocation14 + $0x94] sm:$0xf]  ;;  %s2091_s29 = sld [smem:[#allocation4 + $0x1]] }
  0x4f   :  { %v362_v62 = vrot.slane %v319_v55, 2  ;;  %v384_v63 = vsel %vm373_vm3, %v383_v61, %v356_v57  ;;  %v2082_v27 = vor.u32 %v2347_v25, %v2081_v24  ;;  %v2343_v29 = vld [vmem:[#allocation14 + $0x98] sm:$0xf0]  ;;  %v2063_v32 = vld [vmem:[#allocation14 + $0x9c] sm:$0xf0]  ;;  %s1934_s7 = sshll.u32 %s3351_s14, 4  ;;  %s1935_s7 = int_to_ptr.hbm [resolvable:$true] %s1934_s7 }
  0x50   :  { %v365_v1 = vrot.slane %v324_v59, 1  ;;  %v385_v2 = vsel %vm375_vm4, %v384_v63, %v359_v60  ;;  %610 = vmatpush.bf16.msra.mxu0 %v2074_v22  ;;  %v2062_v31 = vor.u32 %v2343_v29, %v2061_v28  ;;  %v2069_v33 = vld [vmem:[#allocation14 + $0x98] sm:$0xf]  ;;  %v2344_v34 = vld [vmem:[#allocation14 + $0xa0] sm:$0xf0]  ;;  %v2066_v35 = vor.u32 %v2342_v30, %v2063_v32 }
  0x51   :  { %v386_v3 = vsel %vm377_vm5, %v385_v2, %v362_v62  ;;  %v2444_v5 = vpop.eup %2443  ;;  %638 = vmatpush.bf16.msra.mxu2 %v2082_v27  ;;  %v2070_v36 = vor.u32 %v2344_v34, %v2069_v33  ;;  %v2049_v37 = vld [vmem:[#allocation14 + $0x78] sm:$0xf]  ;;  %v2340_v38 = vld [vmem:[#allocation14 + $0x80] sm:$0xf0]  ;;  %v2339_v39 = vld [vmem:[#allocation14 + $0x7c] sm:$0xf] }
  0x52   :  { %v387_v0 = vsel %vm379_vm6, %v386_v3, %v365_v1  ;;  %v393_v6 = vmul.f32 128.0, %v2444_v5  ;;  %vm397_vm7 = vweird.f32 %v2444_v5  ;;  %625 = vmatpush.bf16.msra.mxu1 %v2066_v35  ;;  %v2050_v40 = vor.u32 %v2340_v38, %v2049_v37  ;;  %v2051_v41 = vld [vmem:[#allocation14 + $0x84] sm:$0xf0]  ;;  %v2057_v42 = vld [vmem:[#allocation14 + $0x80] sm:$0xf] }
  0x53   :  { %390 = vadd.xlane.f32.xlu0 %v387_v0  ;;  %v2341_v43 = vld [vmem:[#allocation14 + $0x88] sm:$0xf0]  ;;  %v2037_v46 = vld [vmem:[#allocation14 + $0x60] sm:$0xf]  ;;  %v2336_v48 = vld [vmem:[#allocation14 + $0x64] sm:$0xf] }
  0x54   :  { %v394_v7 = vsub.f32 1.0, %v393_v6  ;;  %611 = vmatpush.bf16.msra.mxu0 %v2062_v31  ;;  %v2058_v45 = vor.u32 %v2341_v43, %v2057_v42  ;;  %v2337_v47 = vld [vmem:[#allocation14 + $0x68] sm:$0xf0]  ;;  %v2039_v50 = vld [vmem:[#allocation14 + $0x6c] sm:$0xf0] }
  0x55   :  { %639 = vmatpush.bf16.msra.mxu2 %v2070_v36  ;;  %v2038_v49 = vor.u32 %v2337_v47, %v2037_v46  ;;  %v2045_v51 = vld [vmem:[#allocation14 + $0x68] sm:$0xf]  ;;  %v2338_v52 = vld [vmem:[#allocation14 + $0x70] sm:$0xf0]  ;;  %v2042_v53 = vor.u32 %v2336_v48, %v2039_v50  ;;  %v2333_v57 = vld [vmem:[#allocation14 + $0x4c] sm:$0xf] }
  0x56   :  { %v395_v8 = vmul.f32 %v2444_v5, %v394_v7  ;;  %v2046_v54 = vor.u32 %v2338_v52, %v2045_v51  ;;  %v2025_v55 = vld [vmem:[#allocation14 + $0x48] sm:$0xf]  ;;  %v2334_v56 = vld [vmem:[#allocation14 + $0x50] sm:$0xf0]  ;;  %v2027_v59 = vld [vmem:[#allocation14 + $0x54] sm:$0xf0] }
  0x57   :  { %v2026_v58 = vor.u32 %v2334_v56, %v2025_v55  ;;  %v2033_v60 = vld [vmem:[#allocation14 + $0x50] sm:$0xf]  ;;  %v2335_v61 = vld [vmem:[#allocation14 + $0x58] sm:$0xf0]  ;;  %v2030_v62 = vor.u32 %v2333_v57, %v2027_v59  ;;  %v2330_v3 = vld [vmem:[#allocation14 + $0x34] sm:$0xf] }
  0x58   :  { %v396_v9 = vadd.f32 %v2444_v5, %v395_v8  ;;  %612 = vmatpush.bf16.msra.mxu0 %v2050_v40  ;;  %v2034_v63 = vor.u32 %v2335_v61, %v2033_v60  ;;  %v2013_v1 = vld [vmem:[#allocation14 + $0x30] sm:$0xf]  ;;  %v2331_v2 = vld [vmem:[#allocation14 + $0x38] sm:$0xf0]  ;;  %v2015_v4 = vld [vmem:[#allocation14 + $0x3c] sm:$0xf0] }
  0x59   :  { %640 = vmatpush.bf16.msra.mxu2 %v2058_v45  ;;  %v2332_v6 = vld [vmem:[#allocation14 + $0x40] sm:$0xf0]  ;;  %v2018_v7 = vor.u32 %v2330_v3, %v2015_v4  ;;  %v1989_v21 = vld [vmem:[#allocation14] sm:$0xf]  ;;  %v2325_v22 = vld [vmem:[#allocation14 + $0x8] sm:$0xf0] }
  0x5a   :  { %v3073_v10 = vsel %vm397_vm7, %v2444_v5, %v396_v9  ;;  %v2021_v5 = vld [vmem:[#allocation14 + $0x38] sm:$0xf]  ;;  %v2324_v23 = vld [vmem:[#allocation14 + $0x4] sm:$0xf]  ;;  %v1990_v25 = vor.u32 %v2325_v22, %v1989_v21  ;;  %v1991_v26 = vld [vmem:[#allocation14 + $0xc] sm:$0xf0]  ;;  %v655_v22 = vstv %s654_s8 }
  0x5b   :  { %v2022_v8 = vor.u32 %v2332_v6, %v2021_v5  ;;  %v2001_v9 = vld [vmem:[#allocation14 + $0x18] sm:$0xf]  ;;  %v1997_v27 = vld [vmem:[#allocation14 + $0x8] sm:$0xf]  ;;  %v2326_v28 = vld [vmem:[#allocation14 + $0x10] sm:$0xf0]  ;;  %v1994_v30 = vor.u32 %v2324_v23, %v1991_v26 }
  0x5c   :  { %613 = vmatpush.bf16.msra.mxu0 %v2038_v49  ;;  %v1998_v31 = vor.u32 %v2326_v28, %v1997_v27  ;;  %v3087_v47 = vld [vmem:[#allocation10] sm:$0xff] }
  0x5d   :  { %641 = vmatpush.bf16.msra.mxu2 %v2046_v54  ;;  %v435_v50 = vperm.slane %v3087_v47, 0  ;;  %v438_v55 = vperm.slane %v3087_v47, 1 }
  0x60   :  { %614 = vmatpush.bf16.msra.mxu0 %v2026_v58 }
  0x61   :  { %642 = vmatpush.bf16.msra.mxu2 %v2034_v63 }
  0x65   :  { %643 = vmatpush.bf16.msra.mxu2 %v2022_v8 }
  0xbe   :  { %v389_v11 = vpop.xlane.xlu0 %388 }
  0xbf   :  { %v399_v12 = vmul.f32 %v3073_v10, %v389_v11  ;;  %v2328_v11 = vld [vmem:[#allocation14 + $0x20] sm:$0xf0] }
  0xc1   :  { %v3076_v13 = vsub.f32 %v380_v44, %v399_v12  ;;  %v2054_v44 = vor.u32 %v2339_v39, %v2051_v41  ;;  %v2327_v12 = vld [vmem:[#allocation14 + $0x1c] sm:$0xf] }
  0xc3   :  { %v403_v14 = vmul.f32 %v3076_v13, %v3076_v13  ;;  %626 = vmatpush.bf16.msra.mxu1 %v2054_v44 }
  0xc5   :  { %405 = vadd.xlane.f32.xlu1 %v403_v14  ;;  %v2002_v14 = vor.u32 %v2328_v11, %v2001_v9 }
  0xc6   :  { %v391_v15 = vpop.xlane.xlu0 %390 }
  0xc7   :  { %v400_v16 = vmul.f32 %v3073_v10, %v391_v15  ;;  %627 = vmatpush.bf16.msra.mxu1 %v2042_v53  ;;  %v2003_v15 = vld [vmem:[#allocation14 + $0x24] sm:$0xf0] }
  0xc8   :  { %v2006_v19 = vor.u32 %v2327_v12, %v2003_v15 }
  0xc9   :  { %v3081_v17 = vsub.f32 %v387_v0, %v400_v16  ;;  %v2014_v0 = vor.u32 %v2331_v2, %v2013_v1  ;;  %v2009_v16 = vld [vmem:[#allocation14 + $0x20] sm:$0xf] }
  0xcb   :  { %v404_v18 = vmul.f32 %v3081_v17, %v3081_v17  ;;  %628 = vmatpush.bf16.msra.mxu1 %v2030_v62  ;;  %615 = vmatpush.bf16.msra.mxu0 %v2014_v0 }
  0xcd   :  { %407 = vadd.xlane.f32.xlu1 %v404_v18  ;;  %v2329_v18 = vld [vmem:[#allocation14 + $0x28] sm:$0xf0] }
  0xce   :  { %v2010_v20 = vor.u32 %v2329_v18, %v2009_v16 }
  0xcf   :  { %629 = vmatpush.bf16.msra.mxu1 %v2018_v7  ;;  %616 = vmatpush.bf16.msra.mxu0 %v2002_v14 }
  0xd0   :  { %644 = vmatpush.bf16.msra.mxu2 %v2010_v20  ;;  %v652_v20 = vlaneseq }
  0xd2   :  { %v3127_v21 = vand.u32 127, %v652_v20 }
  0xd3   :  { %630 = vmatpush.bf16.msra.mxu1 %v2006_v19  ;;  %617 = vmatpush.bf16.msra.mxu0 %v1990_v25 }
  0xd4   :  { %645 = vmatpush.bf16.msra.mxu2 %v1998_v31  ;;  %vm656_vm15 = vcmp.lt.s32.totalorder %v3127_v21, %v655_v22 }
  0xd7   :  { %631 = vmatpush.bf16.msra.mxu1 %v1994_v30 }
 0x138   :  { %v406_v24 = vpop.xlane.xlu1 %405 }
 0x139   :  { %v409_v29 = vmul.f32 %v406_v24, %v3073_v10  ;;  %v2850_v24 = vmov -1e+09  }
 0x13a   :  { %v3131_v25 = vsel %vm656_vm15, 0.0, %v2850_v24 }
 0x13b   :  { %v411_v32 = vadd.f32 1e-12, %v409_v29 }
 0x13d   :  { %2445 = vrsqrt.f32 %v411_v32  ;;  %vm419_vm9 = vweird.f32 %v411_v32 }
 0x140   :  { %v408_v33 = vpop.xlane.xlu1 %407 }
 0x141   :  { %v410_v34 = vmul.f32 %v408_v33, %v3073_v10 }
 0x143   :  { %v2446_v35 = vpop.eup %2445  ;;  %v412_v36 = vadd.f32 1e-12, %v410_v34 }
 0x144   :  { %v414_v37 = vmul.f32 %v2446_v35, %v411_v32  ;;  %vm420_vm8 = vweird.f32 %v2446_v35 }
 0x145   :  { %2447 = vrsqrt.f32 %v412_v36  ;;  %vm421_vm10 = vmor %vm419_vm9, %vm420_vm8  ;;  %vm429_vm12 = vweird.f32 %v412_v36 }
 0x146   :  { %v415_v38 = vmul.f32 %v2446_v35, %v414_v37 }
 0x148   :  { %v416_v39 = vmul.f32 0.5, %v415_v38 }
 0x14a   :  { %v417_v40 = vsub.f32 1.5, %v416_v39 }
 0x14b   :  { %v2448_v41 = vpop.eup %2447 }
 0x14c   :  { %v418_v42 = vmul.f32 %v2446_v35, %v417_v40  ;;  %v424_v43 = vmul.f32 %v2448_v41, %v412_v36  ;;  %vm430_vm11 = vweird.f32 %v2448_v41 }
 0x14d   :  { %vm431_vm13 = vmor %vm429_vm12, %vm430_vm11 }
 0x14e   :  { %v425_v44 = vmul.f32 %v2448_v41, %v424_v43  ;;  %v422_v45 = vsel %vm421_vm10, %v2446_v35, %v418_v42 }
 0x14f   :  { %v433_v49 = vmul.f32 %v422_v45, %v3076_v13  ;;  %v3102_v13 = vld [vmem:[%s3342_s5] sm:$0x7]  ;;  %s2849_s5 = smov 32  }
 0x150   :  { %v426_v46 = vmul.f32 0.5, %v425_v44  ;;  %v477_v60 = vperm.slane %v3102_v13, 1  ;;  %v478_v0 = vperm.slane %v3102_v13, 2 }
 0x151   :  { %v436_v54 = vmul.f32 %v435_v50, %v433_v49 }
 0x152   :  { %v427_v48 = vsub.f32 1.5, %v426_v46 }
 0x153   :  { %v3093_v57 = vadd.f32 %v438_v55, %v436_v54 }
 0x154   :  { %v428_v51 = vmul.f32 %v2448_v41, %v427_v48 }
 0x156   :  { %v432_v52 = vsel %vm431_vm13, %v2448_v41, %v428_v51 }
 0x157   :  { %v434_v53 = vmul.f32 %v432_v52, %v3081_v17  ;;  %v476_v17 = vperm.slane %v3102_v13, 0 }
 0x159   :  { %v437_v56 = vmul.f32 %v435_v50, %v434_v53 }
 0x15b   :  { %v3095_v58 = vadd.f32 %v438_v55, %v437_v56 }
 0x15d   :  { %v473_v59 = vpack.c.bf16 %v3095_v58, %v3093_v57 }
 0x15f   :  { %618 = vmatmul.bf16.vlgmr.msra.gmra.mxu0 %v473_v59  ;;  %632 = vmatmul.bf16.vlgmr.msra.gmra.mxu1 %v473_v59 }
 0x160   :  { %646 = vmatmul.bf16.vlgmr.msra.gmra.mxu2 %v473_v59 }
 0x1dc   :  { %v619_v61 = vpop.f32.mrf.mxu0  ;;  %v633_v62 = vpop.f32.mrf.mxu1 }
 0x1dd   :  { %v620_v63 = vadd.f32 %v619_v61, %v476_v17  ;;  %v634_v1 = vadd.f32 %v633_v62, %v477_v60 }
 0x1df   :  { %v658_v2 = vpack.c.bf16 %v620_v63, %v620_v63  ;;  %v659_v3 = vpack.c.bf16 %v634_v1, %v634_v1 }
 0x1e1   :  { %732 = vrot.lane.b32.xlu0 %v659_v3, %s2848_s4  ;;  %729 = vrot.lane.b32.xlu1 %v658_v2, %s2848_s4  ;;  %v665_v4 = vsel %vm660_vm14, %v659_v3, 0 }
 0x1e2   :  { %674 = vmatpush.bf16.xpose.msrb.mxu0 %v665_v4 }
 0x1e3   :  { %v647_v5 = vpop.f32.mrf.mxu2 }
 0x1e4   :  { %v648_v6 = vadd.f32 %v647_v5, %v478_v0  ;;  %v635_v8 = vpop.f32.mrf.mxu1  ;;  %v621_v14 = vpop.f32.mrf.mxu0 }
 0x1e5   :  { %v636_v11 = vadd.f32 %v635_v8, %v477_v60  ;;  %v622_v15 = vadd.f32 %v621_v14, %v476_v17 }
 0x1e6   :  { %v3112_v7 = vpack.c.bf16 %v648_v6, %v648_v6 }
 0x1e7   :  { %v966_v12 = vpack.c.bf16 %v636_v11, %v636_v11  ;;  %v3121_v16 = vpack.c.bf16 %v622_v15, %v622_v15 }
 0x1e8   :  { %v713_v9 = vsel %vm373_vm3, %v3112_v7, 0 }
 0x1e9   :  { %722 = vmatpush.bf16.msra.mxu3 %v713_v9  ;;  %875 = vrot.lane.b32.xlu0 %v659_v3, %s2849_s5  ;;  %v971_v43 = vsel %vm660_vm14, %v966_v12, 0 }
 0x1ea   :  { %873 = vrot.lane.b32.xlu1 %v658_v2, %s2849_s5  ;;  %2083 = vmatmul.msk.bf16.vlgmr.msrb.gmra.mxu0 %vm660_vm14, %v658_v2 }
 0x1f1   :  { %1037 = vrot.lane.b32.xlu0 %v966_v12, %s2848_s4 }
 0x1f2   :  { %1109 = vrot.lane.b32.xlu1 %v966_v12, %s2839_s20 }
 0x1f9   :  { %1180 = vrot.lane.b32.xlu0 %v966_v12, %s2849_s5 }
 0x1fa   :  { %1178 = vrot.lane.b32.xlu1 %v3121_v16, %s2849_s5 }
 0x253   :  { %v733_v18 = vpop.permute.xlu0 %732  ;;  %v730_v35 = vpop.permute.xlu1 %729 }
 0x254   :  { %v738_v19 = vsel %vm660_vm14, %v733_v18, 0  ;;  %v962_v18 = vstv %s2091_s29 }
 0x255   :  { %747 = vmatpush.bf16.xpose.msrb.mxu3 %v738_v19  ;;  %vm963_vm6 = vcmp.lt.s32.totalorder %v3127_v21, %v962_v18 }
 0x25b   :  { %v876_v56 = vpop.permute.xlu0 %875 }
 0x25c   :  { %v874_v37 = vpop.permute.xlu1 %873  ;;  %v881_v17 = vsel %vm660_vm14, %v876_v56, 0 }
 0x263   :  { %v1038_v60 = vpop.permute.xlu0 %1037 }
 0x264   :  { %v1110_v48 = vpop.permute.xlu1 %1109  ;;  %v1043_v61 = vsel %vm660_vm14, %v1038_v60, 0 }
 0x265   :  { %v1115_v53 = vsel %vm660_vm14, %v1110_v48, 0 }
 0x267   :  { %v676_v23 = vpop.f32.mrf.mxu0 }
 0x268   :  { %v680_v26 = vmul.f32 0.17677669, %v676_v23 }
 0x26a   :  { %v681_v27 = vadd.f32 %v680_v26, %v3131_v25 }
 0x26b   :  { %v1181_v1 = vpop.permute.xlu0 %1180 }
 0x26c   :  { %v683_v28 = vsel %vm682_vm0, %v681_v27, -inf }
 0x26d   :  { %684 = vmax.xlane.f32.xlu2 %v683_v28  ;;  %v964_v28 = vsel %vm963_vm6, 0.0, %v2850_v24 }
 0x26f   :  { %v678_v29 = vpop.f32.mrf.mxu0 }
 0x2e0   :  { %v685_v30 = vpop.xlane.xlu2 %684 }
 0x2e1   :  { %v686_v31 = vsub.f32 %v681_v27, %v685_v30 }
 0x2e3   :  { %v687_v32 = vmul.f32 1.442695, %v686_v31 }
 0x2e5   :  { %2449 = vpow2.f32 %v687_v32 }
 0x2eb   :  { %v2450_v33 = vpop.eup %2449 }
 0x2ec   :  { %v689_v34 = vsel %vm682_vm0, %v2450_v33, 0.0 }
 0x2ed   :  { %690 = vadd.xlane.f32.xlu2 %v689_v34 }
 0x305   :  { %804 = vrot.lane.b32.xlu2 %v659_v3, %s2839_s20  ;;  %v1179_v3 = vpop.permute.xlu1 %1178 }
 0x30d   :  { %802 = vrot.lane.b32.xlu2 %v658_v2, %s2839_s20  ;;  %v1186_v2 = vsel %vm660_vm14, %v1181_v1, 0 }
 0x315   :  { %1034 = vrot.lane.b32.xlu2 %v3121_v16, %s2848_s4 }
 0x31d   :  { %1107 = vrot.lane.b32.xlu2 %v3121_v16, %s2839_s20 }
 0x360   :  { %v691_v36 = vpop.xlane.xlu2 %690 }
 0x361   :  { %2451 = vrcp.f32 %v691_v36  ;;  %v703_v44 = vand.u32 2147483648, %v691_v36  ;;  %v701_v46 = vand.u32 2147483647, %v691_v36  ;;  %vm697_vm2 = vweird.f32 %v691_v36 }
 0x363   :  { %v704_v50 = vor.u32 1.1754944e-38, %v703_v44  ;;  %vm702_vm5 = vcmp.eq.f32.partialorder %v701_v46, 8.507059e+37 }
 0x367   :  { %v2452_v38 = vpop.eup %2451 }
 0x368   :  { %v693_v39 = vmul.f32 %v2452_v38, %v691_v36  ;;  %v805_v40 = vpop.permute.xlu2 %804  ;;  %vm698_vm1 = vweird.f32 %v2452_v38 }
 0x369   :  { %v810_v41 = vsel %vm660_vm14, %v805_v40, 0  ;;  %vm699_vm4 = vmor %vm697_vm2, %vm698_vm1 }
 0x36a   :  { %v694_v42 = vsub.f32 1.0, %v693_v39  ;;  %819 = vmatpush.bf16.xpose.msrb.mxu1 %v810_v41 }
 0x36c   :  { %v695_v45 = vmul.f32 %v2452_v38, %v694_v42 }
 0x36e   :  { %v696_v49 = vadd.f32 %v2452_v38, %v695_v45 }
 0x370   :  { %v803_v51 = vpop.permute.xlu2 %802  ;;  %v700_v52 = vsel %vm699_vm4, %v2452_v38, %v696_v49 }
 0x371   :  { %2087 = vmatmul.msk.bf16.vlgmr.msrb.gmra.mxu1 %vm660_vm14, %v803_v51  ;;  %v705_v54 = vsel %vm702_vm5, %v704_v50, %v700_v52 }
 0x372   :  { %980 = vmatpush.bf16.xpose.msra.mxu1 %v971_v43  ;;  %v706_v55 = vmul.f32 %v2450_v33, %v705_v54 }
 0x374   :  { %v707_v59 = vpack.c.bf16 %v706_v55, %v706_v55 }
 0x376   :  { %2084 = vmatmul.msk.bf16.vlgmr.msra.gmra.mxu3 %vm682_vm0, %v707_v59 }
 0x377   :  { %890 = vmatpush.bf16.xpose.msra.mxu3 %v881_v17 }
 0x378   :  { %v1035_v62 = vpop.permute.xlu2 %1034 }
 0x37a   :  { %1124 = vmatpush.bf16.xpose.msrb.mxu1 %v1115_v53 }
 0x380   :  { %v1108_v63 = vpop.permute.xlu2 %1107 }
 0x381   :  { %2092 = vmatmul.msk.bf16.vlgmr.msra.gmra.mxu1 %vm660_vm14, %v3121_v16 }
 0x386   :  { %2085 = vmatmul.msk.bf16.vlgmr.msrb.gmra.mxu3 %vm660_vm14, %v730_v35 }
 0x387   :  { %1052 = vmatpush.bf16.xpose.msrb.mxu3 %v1043_v61 }
 0x391   :  { %2096 = vmatmul.msk.bf16.vlgmr.msrb.gmra.mxu1 %vm660_vm14, %v1108_v63 }
 0x396   :  { %2089 = vmatmul.msk.bf16.vlgmr.msra.gmra.mxu3 %vm660_vm14, %v874_v37 }
 0x397   :  { %1195 = vmatpush.bf16.xpose.msra.mxu3 %v1186_v2 }
 0x3a6   :  { %2094 = vmatmul.msk.bf16.vlgmr.msrb.gmra.mxu3 %vm660_vm14, %v1035_v62 }
 0x3b6   :  { %2098 = vmatmul.msk.bf16.vlgmr.msra.gmra.mxu3 %vm660_vm14, %v1179_v3 }
 0x3ee   :  { %v821_v4 = vpop.f32.mrf.mxu1 }
 0x3ef   :  { %v825_v5 = vmul.f32 0.17677669, %v821_v4 }
 0x3f1   :  { %v826_v6 = vadd.f32 %v825_v5, %v3131_v25 }
 0x3f3   :  { %v827_v8 = vsel %vm682_vm0, %v826_v6, -inf }
 0x3f4   :  { %828 = vmax.xlane.f32.xlu2 %v827_v8 }
 0x3f6   :  { %v823_v9 = vpop.f32.mrf.mxu1 }
 0x3f9   :  { %v3159_v11 = vpop.f32.mrf.mxu3 }
 0x3fe   :  { %v982_v12 = vpop.f32.mrf.mxu1 }
 0x3ff   :  { %v986_v22 = vmul.f32 0.17677669, %v982_v12 }
 0x401   :  { %v726_v14 = vpop.f32.mrf.mxu3  ;;  %v987_v31 = vadd.f32 %v986_v22, %v964_v28 }
 0x403   :  { %v988_v34 = vsel %vm682_vm0, %v987_v31, -inf }
 0x406   :  { %v984_v15 = vpop.f32.mrf.mxu1 }
 0x409   :  { %v749_v16 = vpop.f32.mrf.mxu3 }
 0x40a   :  { %v753_v19 = vmul.f32 0.17677669, %v749_v16  ;;  %v649_v16 = vpop.f32.mrf.mxu2 }
 0x40b   :  { %v650_v18 = vadd.f32 %v649_v16, %v478_v0 }
 0x40c   :  { %v754_v20 = vadd.f32 %v753_v19, %v3131_v25 }
 0x40d   :  { %v3199_v22 = vpack.c.bf16 %v650_v18, %v650_v18 }
 0x40e   :  { %v1126_v23 = vpop.f32.mrf.mxu1  ;;  %v755_v26 = vsel %vm682_vm0, %v754_v20, -inf }
 0x40f   :  { %v1130_v27 = vmul.f32 0.17677669, %v1126_v23  ;;  %756 = vmax.xlane.f32.xlu0 %v755_v26 }
 0x411   :  { %v751_v29 = vpop.f32.mrf.mxu3  ;;  %v1131_v30 = vadd.f32 %v1130_v27, %v964_v28 }
 0x413   :  { %v1132_v32 = vsel %vm682_vm0, %v1131_v30, -inf }
 0x414   :  { %1133 = vmax.xlane.f32.xlu1 %v1132_v32 }
 0x416   :  { %v1128_v33 = vpop.f32.mrf.mxu1 }
 0x417   :  { %989 = vmax.xlane.f32.xlu0 %v988_v34 }
 0x419   :  { %v892_v35 = vpop.f32.mrf.mxu3 }
 0x41a   :  { %v896_v50 = vmul.f32 0.17677669, %v892_v35 }
 0x41c   :  { %v897_v52 = vadd.f32 %v896_v50, %v3131_v25 }
 0x41e   :  { %v898_v53 = vsel %vm682_vm0, %v897_v52, -inf }
 0x421   :  { %v894_v21 = vpop.f32.mrf.mxu3 }
 0x429   :  { %v1054_v36 = vpop.f32.mrf.mxu3 }
 0x42a   :  { %v1058_v37 = vmul.f32 0.17677669, %v1054_v36 }
 0x42c   :  { %v1059_v38 = vadd.f32 %v1058_v37, %v964_v28 }
 0x42e   :  { %v1060_v39 = vsel %vm682_vm0, %v1059_v38, -inf }
 0x42f   :  { %1061 = vmax.xlane.f32.xlu2 %v1060_v39 }
 0x431   :  { %v1056_v40 = vpop.f32.mrf.mxu3 }
 0x439   :  { %v1197_v24 = vpop.f32.mrf.mxu3 }
 0x43a   :  { %v1201_v41 = vmul.f32 0.17677669, %v1197_v24 }
 0x43c   :  { %v3168_v42 = vadd.f32 %v1201_v41, %v964_v28 }
 0x43e   :  { %v1203_v43 = vsel %vm682_vm0, %v3168_v42, -inf }
 0x43f   :  { %1204 = vmax.xlane.f32.xlu0 %v1203_v43 }
 0x441   :  { %v1199_v44 = vpop.f32.mrf.mxu3 }
 0x467   :  { %v829_v45 = vpop.xlane.xlu2 %828 }
 0x468   :  { %v830_v46 = vsub.f32 %v826_v6, %v829_v45 }
 0x46a   :  { %v831_v48 = vmul.f32 1.442695, %v830_v46 }
 0x46c   :  { %2453 = vpow2.f32 %v831_v48 }
 0x472   :  { %v3172_v49 = vpop.eup %2453 }
 0x473   :  { %v833_v51 = vsel %vm682_vm0, %v3172_v49, 0.0 }
 0x474   :  { %834 = vadd.xlane.f32.xlu1 %v833_v51 }
 0x47c   :  { %899 = vmax.xlane.f32.xlu1 %v898_v53 }
 0x482   :  { %v757_v54 = vpop.xlane.xlu0 %756 }
 0x483   :  { %v758_v55 = vsub.f32 %v754_v20, %v757_v54 }
 0x485   :  { %v759_v56 = vmul.f32 1.442695, %v758_v55 }
 0x487   :  { %2455 = vpow2.f32 %v759_v56  ;;  %v1134_v1 = vpop.xlane.xlu1 %1133 }
 0x488   :  { %v1135_v2 = vsub.f32 %v1131_v30, %v1134_v1 }
 0x48a   :  { %v990_v59 = vpop.xlane.xlu0 %989  ;;  %v1136_v3 = vmul.f32 1.442695, %v1135_v2 }
 0x48b   :  { %v991_v17 = vsub.f32 %v987_v31, %v990_v59 }
 0x48d   :  { %v2456_v60 = vpop.eup %2455  ;;  %v992_v61 = vmul.f32 1.442695, %v991_v17 }
 0x48e   :  { %v761_v62 = vsel %vm682_vm0, %v2456_v60, 0.0 }
 0x48f   :  { %2457 = vpow2.f32 %v992_v61  ;;  %762 = vadd.xlane.f32.xlu2 %v761_v62 }
 0x490   :  { %2459 = vpow2.f32 %v1136_v3 }
 0x495   :  { %v3179_v63 = vpop.eup %2457 }
 0x496   :  { %v994_v25 = vsel %vm682_vm0, %v3179_v63, 0.0  ;;  %v3187_v6 = vpop.eup %2459 }
 0x497   :  { %995 = vadd.xlane.f32.xlu1 %v994_v25  ;;  %v1138_v9 = vsel %vm682_vm0, %v3187_v6, 0.0 }
 0x4a2   :  { %v1062_v4 = vpop.xlane.xlu2 %1061 }
 0x4a3   :  { %v1063_v5 = vsub.f32 %v1059_v38, %v1062_v4 }
 0x4a5   :  { %v1064_v8 = vmul.f32 1.442695, %v1063_v5 }
 0x4a7   :  { %781 = vrot.lane.b32.xlu2 %v3112_v7, %s2848_s4  ;;  %2461 = vpow2.f32 %v1064_v8 }
 0x4ad   :  { %v3191_v12 = vpop.eup %2461 }
 0x4ae   :  { %v1066_v14 = vsel %vm682_vm0, %v3191_v12, 0.0 }
 0x4b0   :  { %923 = vrot.lane.b32.xlu1 %v3112_v7, %s2849_s5 }
 0x4b2   :  { %v1205_v43 = vpop.xlane.xlu0 %1204 }
 0x4b3   :  { %v1206_v44 = vsub.f32 %v3168_v42, %v1205_v43 }
 0x4b5   :  { %v1207_v45 = vmul.f32 1.442695, %v1206_v44 }
 0x4d0   :  { %1139 = vadd.xlane.f32.xlu2 %v1138_v9 }
 0x4da   :  { %1067 = vadd.xlane.f32.xlu1 %v1066_v14 }
 0x4e7   :  { %v3195_v15 = vpop.xlane.xlu1 %834 }
 0x4e8   :  { %vm841_vm12 = vweird.f32 %v3195_v15  ;;  %v847_v62 = vand.u32 2147483648, %v3195_v15  ;;  %v845_v2 = vand.u32 2147483647, %v3195_v15 }
 0x4ea   :  { %v848_v18 = vor.u32 1.1754944e-38, %v847_v62  ;;  %vm846_vm1 = vcmp.eq.f32.partialorder %v845_v2, 8.507059e+37 }
 0x4ef   :  { %v900_v19 = vpop.xlane.xlu1 %899 }
 0x4f0   :  { %v901_v20 = vsub.f32 %v897_v52, %v900_v19 }
 0x4f2   :  { %v902_v23 = vmul.f32 1.442695, %v901_v20 }
 0x4f3   :  { %1086 = vrot.lane.b32.xlu1 %v3199_v22, %s2848_s4 }
 0x4f4   :  { %2463 = vpow2.f32 %v902_v23 }
 0x4fa   :  { %v3203_v26 = vpop.eup %2463 }
 0x4fb   :  { %1157 = vrot.lane.b32.xlu1 %v3199_v22, %s2839_s20  ;;  %v904_v27 = vsel %vm682_vm0, %v3203_v26, 0.0 }
 0x4fc   :  { %905 = vadd.xlane.f32.xlu0 %v904_v27 }
 0x502   :  { %v763_v13 = vpop.xlane.xlu2 %762 }
 0x503   :  { %2465 = vrcp.f32 %v763_v13  ;;  %1228 = vrot.lane.b32.xlu1 %v3199_v22, %s2849_s5  ;;  %v775_v32 = vand.u32 2147483648, %v763_v13  ;;  %v773_v34 = vand.u32 2147483647, %v763_v13  ;;  %vm769_vm8 = vweird.f32 %v763_v13 }
 0x504   :  { %2467 = vpow2.f32 %v1207_v45 }
 0x505   :  { %v776_v21 = vor.u32 1.1754944e-38, %v775_v32  ;;  %vm774_vm10 = vcmp.eq.f32.partialorder %v773_v34, 8.507059e+37  ;;  %2469 = vrcp.f32 %v3195_v15 }
 0x509   :  { %v2466_v0 = vpop.eup %2465 }
 0x50a   :  { %v765_v28 = vmul.f32 %v2466_v0, %v763_v13  ;;  %v782_v29 = vpop.permute.xlu2 %781  ;;  %vm770_vm7 = vweird.f32 %v2466_v0  ;;  %v3215_v40 = vpop.xlane.xlu1 %995 }
 0x50b   :  { %v787_v31 = vsel %vm373_vm3, %v782_v29, 0  ;;  %vm771_vm9 = vmor %vm769_vm8, %vm770_vm7  ;;  %v1008_v43 = vand.u32 2147483648, %v3215_v40  ;;  %v1006_v44 = vand.u32 2147483647, %v3215_v40 }
 0x50c   :  { %v766_v30 = vsub.f32 1.0, %v765_v28  ;;  %796 = vmatpush.bf16.msra.mxu0 %v787_v31 }
 0x50e   :  { %v767_v33 = vmul.f32 %v2466_v0, %v766_v30 }
 0x510   :  { %v768_v35 = vadd.f32 %v2466_v0, %v767_v33  ;;  %852 = vrot.lane.b32.xlu0 %v3112_v7, %s2839_s20  ;;  %v3219_v7 = vpop.eup %2467 }
 0x511   :  { %v1209_v46 = vsel %vm682_vm0, %v3219_v7, 0.0  ;;  %v2470_v52 = vpop.eup %2469 }
 0x512   :  { %v772_v36 = vsel %vm771_vm9, %v2466_v0, %v768_v35  ;;  %v837_v53 = vmul.f32 %v2470_v52, %v3195_v15  ;;  %vm842_vm11 = vweird.f32 %v2470_v52 }
 0x513   :  { %v777_v37 = vsel %vm774_vm10, %v776_v21, %v772_v36  ;;  %vm3236_vm13 = vmor %vm841_vm12, %vm842_vm11  ;;  %v1018_v36 = vsel %vm373_vm3, %v3199_v22, 0  ;;  %vm1002_vm10 = vweird.f32 %v3215_v40  ;;  %vm1007_vm12 = vcmp.eq.f32.partialorder %v1006_v44, 8.507059e+37  ;;  %v2348_v44 = vld [vmem:[#allocation16] sm:$0xff] }
 0x514   :  { %v778_v38 = vmul.f32 %v2456_v60, %v777_v37  ;;  %v838_v42 = vsub.f32 1.0, %v837_v53 }
 0x516   :  { %v779_v39 = vpack.c.bf16 %v778_v38, %v778_v38  ;;  %v839_v55 = vmul.f32 %v2470_v52, %v838_v42 }
 0x518   :  { %2086 = vmatmul.msk.bf16.vlgmr.msra.gmra.mxu0 %vm682_vm0, %v779_v39  ;;  %v840_v17 = vadd.f32 %v2470_v52, %v839_v55 }
 0x51a   :  { %v844_v8 = vsel %vm3236_vm13, %v2470_v52, %v840_v17 }
 0x51b   :  { %v849_v23 = vsel %vm846_vm1, %v848_v18, %v844_v8 }
 0x51c   :  { %v850_v31 = vmul.f32 %v3172_v49, %v849_v23 }
 0x51e   :  { %v851_v49 = vpack.c.bf16 %v850_v31, %v850_v31 }
 0x522   :  { %v924_v24 = vpop.permute.xlu1 %923 }
 0x523   :  { %v929_v41 = vsel %vm373_vm3, %v924_v24, 0 }
 0x524   :  { %938 = vmatpush.bf16.msrb.mxu0 %v929_v41 }
 0x53a   :  { %1210 = vadd.xlane.f32.xlu0 %v1209_v46 }
 0x543   :  { %v1140_v13 = vpop.xlane.xlu2 %1139 }
 0x544   :  { %v1150_v62 = vand.u32 2147483647, %v1140_v13 }
 0x54d   :  { %v3223_v48 = vpop.xlane.xlu1 %1067 }
 0x54e   :  { %2471 = vrcp.f32 %v3223_v48  ;;  %v1080_v38 = vand.u32 2147483648, %v3223_v48  ;;  %vm1074_vm8 = vweird.f32 %v3223_v48  ;;  %v1078_v22 = vand.u32 2147483647, %v3223_v48 }
 0x550   :  { %v1081_v46 = vor.u32 1.1754944e-38, %v1080_v38  ;;  %v2354_v38 = vld [vmem:[#allocation16 + $0x30] sm:$0xff] }
 0x554   :  { %v3230_v56 = vpop.eup %2471 }
 0x555   :  { %v1070_v3 = vmul.f32 %v3230_v56, %v3223_v48  ;;  %vm1075_vm6 = vweird.f32 %v3230_v56 }
 0x556   :  { %vm1076_vm9 = vmor %vm1074_vm8, %vm1075_vm6  ;;  %vm959_vm8 = vcmask 785408  }
 0x557   :  { %v1071_v19 = vsub.f32 1.0, %v1070_v3 }
 0x559   :  { %v1072_v29 = vmul.f32 %v3230_v56, %v1071_v19 }
 0x55b   :  { %v1073_v37 = vadd.f32 %v3230_v56, %v1072_v29 }
 0x55d   :  { %v1077_v45 = vsel %vm1076_vm9, %v3230_v56, %v1073_v37 }
 0x565   :  { %v1087_v50 = vpop.permute.xlu1 %1086 }
 0x566   :  { %v1092_v51 = vsel %vm373_vm3, %v1087_v50, 0 }
 0x567   :  { %1101 = vmatpush.bf16.msra.mxu0 %v1092_v51  ;;  %v1009_v51 = vor.u32 1.1754944e-38, %v1008_v43  ;;  %v2349_v43 = vld [vmem:[#allocation16 + $0x8] sm:$0xff] }
 0x56d   :  { %v1158_v25 = vpop.permute.xlu1 %1157 }
 0x56e   :  { %v1163_v24 = vsel %vm373_vm3, %v1158_v25, 0 }
 0x56f   :  { %v906_v54 = vpop.xlane.xlu0 %905 }
 0x570   :  { %2473 = vrcp.f32 %v906_v54  ;;  %v918_v5 = vand.u32 2147483648, %v906_v54  ;;  %v916_v16 = vand.u32 2147483647, %v906_v54  ;;  %vm912_vm2 = vweird.f32 %v906_v54 }
 0x571   :  { %2475 = vrcp.f32 %v3215_v40 }
 0x572   :  { %v919_v15 = vor.u32 1.1754944e-38, %v918_v5  ;;  %vm917_vm5 = vcmp.eq.f32.partialorder %v916_v16, 8.507059e+37  ;;  %2477 = vrcp.f32 %v1140_v13 }
 0x575   :  { %v1229_v32 = vpop.permute.xlu1 %1228 }
 0x576   :  { %v2474_v59 = vpop.eup %2473 }
 0x577   :  { %v908_v60 = vmul.f32 %v2474_v59, %v906_v54  ;;  %v3232_v61 = vpop.eup %2475  ;;  %vm913_vm15 = vweird.f32 %v2474_v59 }
 0x578   :  { %v998_v9 = vmul.f32 %v3232_v61, %v3215_v40  ;;  %vm914_vm4 = vmor %vm912_vm2, %vm913_vm15  ;;  %vm1003_vm7 = vweird.f32 %v3232_v61  ;;  %v2478_v41 = vpop.eup %2477  ;;  %vm1146_vm15 = vweird.f32 %v1140_v13  ;;  %vm1151_vm2 = vcmp.eq.f32.partialorder %v1150_v62, 8.507059e+37 }
 0x579   :  { %v909_v4 = vsub.f32 1.0, %v908_v60  ;;  %vm1004_vm11 = vmor %vm1002_vm10, %vm1003_vm7  ;;  %v1142_v50 = vmul.f32 %v2478_v41, %v1140_v13  ;;  %vm1147_vm13 = vweird.f32 %v2478_v41  ;;  %v1281_v62 = vperm.slane %v3087_v47, 2 }
 0x57a   :  { %v999_v27 = vsub.f32 1.0, %v998_v9  ;;  %vm1148_vm1 = vmor %vm1146_vm15, %vm1147_vm13 }
 0x57b   :  { %v910_v14 = vmul.f32 %v2474_v59, %v909_v4  ;;  %v1143_v42 = vsub.f32 1.0, %v1142_v50 }
 0x57c   :  { %v1000_v34 = vmul.f32 %v3232_v61, %v999_v27 }
 0x57d   :  { %v911_v20 = vadd.f32 %v2474_v59, %v910_v14  ;;  %v1144_v40 = vmul.f32 %v2478_v41, %v1143_v42 }
 0x57e   :  { %v1001_v39 = vadd.f32 %v3232_v61, %v1000_v34 }
 0x57f   :  { %v915_v0 = vsel %vm914_vm4, %v2474_v59, %v911_v20  ;;  %v1145_v60 = vadd.f32 %v2478_v41, %v1144_v40 }
 0x580   :  { %v920_v28 = vsel %vm917_vm5, %v919_v15, %v915_v0  ;;  %v1005_v48 = vsel %vm1004_vm11, %v3232_v61, %v1001_v39  ;;  %v1152_v61 = vand.u32 2147483648, %v1140_v13  ;;  %v2353_v39 = vld [vmem:[#allocation16 + $0x28] sm:$0xff] }
 0x581   :  { %v921_v30 = vmul.f32 %v3203_v26, %v920_v28  ;;  %v1234_v26 = vsel %vm373_vm3, %v1229_v32, 0  ;;  %v1010_v53 = vsel %vm1007_vm12, %v1009_v51, %v1005_v48  ;;  %v1149_v25 = vsel %vm1148_vm1, %v2478_v41, %v1145_v60  ;;  %v2350_v41 = vld [vmem:[#allocation16 + $0x10] sm:$0xff] }
 0x582   :  { %v853_v33 = vpop.permute.xlu0 %852  ;;  %v1011_v55 = vmul.f32 %v3179_v63, %v1010_v53  ;;  %v1153_v1 = vor.u32 1.1754944e-38, %v1152_v61 }
 0x583   :  { %v858_v35 = vsel %vm373_vm3, %v853_v33, 0  ;;  %v922_v21 = vpack.c.bf16 %v921_v30, %v921_v30  ;;  %vm1079_vm3 = vcmp.eq.f32.partialorder %v1078_v22, 8.507059e+37  ;;  %v2352_v22 = vld [vmem:[#allocation16 + $0x20] sm:$0xff] }
 0x584   :  { %867 = vmatpush.bf16.msrb.mxu2 %v858_v35  ;;  %v1082_v52 = vsel %vm1079_vm3, %v1081_v46, %v1077_v45  ;;  %v1012_v17 = vpack.c.bf16 %v1011_v55, %v1011_v55  ;;  %v1154_v2 = vsel %vm1151_vm2, %v1153_v1, %v1149_v25 }
 0x585   :  { %2090 = vmatmul.msk.bf16.vlgmr.msrb.gmra.mxu0 %vm682_vm0, %v922_v21  ;;  %v1083_v54 = vmul.f32 %v3191_v12, %v1082_v52  ;;  %v1155_v63 = vmul.f32 %v3187_v6, %v1154_v2 }
 0x586   :  { %1243 = vmatpush.bf16.msrb.mxu0 %v1234_v26 }
 0x587   :  { %2088 = vmatmul.msk.bf16.vlgmr.msrb.gmra.mxu2 %vm682_vm0, %v851_v49  ;;  %v1084_v59 = vpack.c.bf16 %v1083_v54, %v1083_v54  ;;  %v1156_v3 = vpack.c.bf16 %v1155_v63, %v1155_v63  ;;  %v2355_v49 = vld [vmem:[#allocation16 + $0x38] sm:$0xff] }
 0x588   :  { %1027 = vmatpush.bf16.msra.mxu2 %v1018_v36  ;;  %1330 = vmatpush.bf16.msra.mxu1 %v2355_v49  ;;  %v2158_v49 = vld [vmem:[#allocation17 + $0x30] sm:$0xf] }
 0x58c   :  { %1172 = vmatpush.bf16.msrb.mxu2 %v1163_v24  ;;  %1331 = vmatpush.bf16.msra.mxu1 %v2354_v38  ;;  %v2351_v24 = vld [vmem:[#allocation16 + $0x18] sm:$0xff] }
 0x58d   :  { %v2363_v38 = vld [vmem:[#allocation17 + $0x34] sm:$0xf0] }
 0x590   :  { %1332 = vmatpush.bf16.msra.mxu1 %v2353_v39  ;;  %v2362_v39 = vld [vmem:[#allocation17 + $0x34] sm:$0xf] }
 0x594   :  { %1333 = vmatpush.bf16.msra.mxu1 %v2352_v22  ;;  %v2159_v22 = vor.u32 %v2363_v38, %v2158_v49  ;;  %v2383_v49 = vld [vmem:[#allocation19 + $0x58] sm:$0xff]  ;;  %v2374_v38 = vld [vmem:[#allocation19 + $0x10] sm:$0xff] }
 0x595   :  { %v798_v56 = vpop.f32.mrf.mxu0  ;;  %2095 = vmatmul.msk.bf16.vlgmr.msra.gmra.mxu0 %vm682_vm0, %v1084_v59 }
 0x597   :  { %2093 = vmatmul.msk.bf16.vlgmr.msra.gmra.mxu2 %vm682_vm0, %v1012_v17 }
 0x598   :  { %1334 = vmatpush.bf16.msra.mxu1 %v2351_v24  ;;  %v2160_v24 = vld [vmem:[#allocation17 + $0x38] sm:$0xf0] }
 0x59c   :  { %1335 = vmatpush.bf16.msra.mxu1 %v2350_v41  ;;  %v2163_v41 = vor.u32 %v2362_v39, %v2160_v24  ;;  %v2382_v39 = vld [vmem:[#allocation19 + $0x50] sm:$0xff]  ;;  %v2373_v24 = vld [vmem:[#allocation19 + $0x8] sm:$0xff] }
 0x59d   :  { %v800_v12 = vpop.f32.mrf.mxu0 }
 0x5a0   :  { %1336 = vmatpush.bf16.msra.mxu1 %v2349_v43  ;;  %v2150_v43 = vld [vmem:[#allocation17 + $0x20] sm:$0xf] }
 0x5a4   :  { %1337 = vmatpush.bf16.msra.mxu1 %v2348_v44  ;;  %v2361_v44 = vld [vmem:[#allocation17 + $0x24] sm:$0xf0] }
 0x5a7   :  { %2097 = vmatmul.msk.bf16.vlgmr.msrb.gmra.mxu2 %vm682_vm0, %v1156_v3 }
 0x5ad   :  { %v1211_v4 = vpop.xlane.xlu0 %1210 }
 0x5ae   :  { %2479 = vrcp.f32 %v1211_v4  ;;  %v1223_v14 = vand.u32 2147483648, %v1211_v4  ;;  %v1221_v18 = vand.u32 2147483647, %v1211_v4  ;;  %vm1217_vm5 = vweird.f32 %v1211_v4 }
 0x5b0   :  { %v1224_v20 = vor.u32 1.1754944e-38, %v1223_v14  ;;  %vm1222_vm7 = vcmp.eq.f32.partialorder %v1221_v18, 8.507059e+37  ;;  %v2370_v18 = vld [vmem:[#allocation17 + $0x74] sm:$0xf] }
 0x5b4   :  { %v2480_v5 = vpop.eup %2479 }
 0x5b5   :  { %v1213_v8 = vmul.f32 %v2480_v5, %v1211_v4  ;;  %vm1218_vm4 = vweird.f32 %v2480_v5 }
 0x5b6   :  { %vm1219_vm6 = vmor %vm1217_vm5, %vm1218_vm4 }
 0x5b7   :  { %v1214_v9 = vsub.f32 1.0, %v1213_v8 }
 0x5b9   :  { %v1215_v16 = vmul.f32 %v2480_v5, %v1214_v9 }
 0x5bb   :  { %v1216_v19 = vadd.f32 %v2480_v5, %v1215_v16  ;;  %v2371_v16 = vld [vmem:[#allocation17 + $0x74] sm:$0xf0] }
 0x5bd   :  { %v1220_v15 = vsel %vm1219_vm6, %v2480_v5, %v1216_v19 }
 0x5be   :  { %v1225_v23 = vsel %vm1222_vm7, %v1224_v20, %v1220_v15  ;;  %v2192_v20 = vld [vmem:[#allocation17 + $0x78] sm:$0xf0] }
 0x5bf   :  { %v1226_v6 = vmul.f32 %v3219_v7, %v1225_v23  ;;  %v2195_v15 = vor.u32 %v2370_v18, %v2192_v20  ;;  %v2182_v23 = vld [vmem:[#allocation17 + $0x60] sm:$0xf] }
 0x5c1   :  { %v1227_v27 = vpack.c.bf16 %v1226_v6, %v1226_v6  ;;  %1509 = vmatpush.bf16.msrb.mxu3 %v2195_v15  ;;  %v2369_v6 = vld [vmem:[#allocation17 + $0x64] sm:$0xf0] }
 0x5c3   :  { %2099 = vmatmul.msk.bf16.vlgmr.msrb.gmra.mxu0 %vm682_vm0, %v1227_v27  ;;  %vm957_vm0 = vcmask 523264   ;;  %v2368_v27 = vld [vmem:[#allocation17 + $0x64] sm:$0xf] }
 0x602   :  { %v940_v13 = vpop.f32.mrf.mxu0 }
 0x60a   :  { %v869_v0 = vpop.f32.mrf.mxu2  ;;  %v942_v28 = vpop.f32.mrf.mxu0 }
 0x612   :  { %v871_v29 = vpop.f32.mrf.mxu2  ;;  %v1103_v30 = vpop.f32.mrf.mxu0 }
 0x613   :  { %v2428_v31 = vpack.i.bf16 %v1103_v30, %v798_v56  ;;  %v2174_v29 = vld [vmem:[#allocation17 + $0x50] sm:$0xf]  ;;  %v2367_v30 = vld [vmem:[#allocation17 + $0x54] sm:$0xf0] }
 0x615   :  { %2429 = vrot.lane.b32.xlu2 %v2428_v31, %s2849_s5  ;;  %v2366_v31 = vld [vmem:[#allocation17 + $0x54] sm:$0xf] }
 0x61a   :  { %v1029_v32 = vpop.f32.mrf.mxu2  ;;  %v1105_v33 = vpop.f32.mrf.mxu0 }
 0x61b   :  { %v2176_v33 = vld [vmem:[#allocation17 + $0x58] sm:$0xf0] }
 0x622   :  { %v1031_v34 = vpop.f32.mrf.mxu2 }
 0x623   :  { %v2179_v34 = vor.u32 %v2366_v31, %v2176_v33  ;;  %v2379_v33 = vld [vmem:[#allocation19 + $0x38] sm:$0xff] }
 0x624   :  { %1690 = vmatpush.bf16.msra.mxu0 %v2379_v33 }
 0x62a   :  { %v1174_v35 = vpop.f32.mrf.mxu2 }
 0x62b   :  { %v2433_v21 = vpack.i.bf16 %v1174_v35, %v869_v0  ;;  %v2184_v0 = vld [vmem:[#allocation17 + $0x68] sm:$0xf0]  ;;  %v2166_v35 = vld [vmem:[#allocation17 + $0x40] sm:$0xf] }
 0x62c   :  { %v2187_v28 = vor.u32 %v2368_v27, %v2184_v0 }
 0x62d   :  { %2434 = vrot.lane.b32.xlu0 %v2433_v21, %s2839_s20  ;;  %v2365_v21 = vld [vmem:[#allocation17 + $0x44] sm:$0xf0]  ;;  %s2851_s20 = smov [#allocation23]  }
 0x62e   :  { %1510 = vmatpush.bf16.msrb.mxu3 %v2187_v28  ;;  %s1932_s30 = sshll.u32 %s2851_s20, 4  ;;  %s1933_s30 = int_to_ptr.vmem [resolvable:$true] %s1932_s30 }
 0x632   :  { %v1176_v36 = vpop.f32.mrf.mxu2  ;;  %1511 = vmatpush.bf16.msrb.mxu3 %v2179_v34  ;;  %v2387_v34 = vld [vmem:[#allocation19 + $0x78] sm:$0xff] }
 0x633   :  { %v2364_v36 = vld [vmem:[#allocation17 + $0x44] sm:$0xf]  ;;  %1704 = vmatpush.bf16.msrb.mxu1 %v2387_v34 }
 0x640   :  { %v1245_v7 = vpop.f32.mrf.mxu0 }
 0x641   :  { %v2438_v37 = vpack.i.bf16 %v1245_v7, %v940_v13  ;;  %v2183_v13 = vor.u32 %v2369_v6, %v2182_v23  ;;  %v2167_v7 = vor.u32 %v2365_v21, %v2166_v35  ;;  %v3304_v23 = vld [vmem:[#allocation10] sm:$0xff] }
 0x642   :  { %v1386_v6 = vperm.slane %v3304_v23, 3  ;;  %v2378_v35 = vld [vmem:[#allocation19 + $0x30] sm:$0xff] }
 0x643   :  { %2439 = vrot.lane.b32.xlu1 %v2438_v37, %s2848_s4  ;;  %v2168_v37 = vld [vmem:[#allocation17 + $0x48] sm:$0xf0]  ;;  %v2386_v21 = vld [vmem:[#allocation19 + $0x70] sm:$0xff]  ;;  %1691 = vmatpush.bf16.msra.mxu0 %v2378_v35 }
 0x644   :  { %1705 = vmatpush.bf16.msrb.mxu1 %v2386_v21 }
 0x648   :  { %v1247_v26 = vpop.f32.mrf.mxu0 }
 0x649   :  { %v2171_v26 = vor.u32 %v2364_v36, %v2168_v37  ;;  %v2385_v36 = vld [vmem:[#allocation19 + $0x68] sm:$0xff]  ;;  %v2384_v37 = vld [vmem:[#allocation19 + $0x60] sm:$0xff] }
 0x64a   :  { %1706 = vmatpush.bf16.msrb.mxu1 %v2385_v36  ;;  %v1593_v36 = vperm.slane %v3304_v23, 5 }
 0x64b   :  { %1512 = vmatpush.bf16.msrb.mxu3 %v2171_v26  ;;  %v2375_v26 = vld [vmem:[#allocation19 + $0x18] sm:$0xff] }
 0x64e   :  { %1707 = vmatpush.bf16.msrb.mxu1 %v2384_v37 }
 0x64f   :  { %1513 = vmatpush.bf16.msrb.mxu3 %v2163_v41  ;;  %v2381_v41 = vld [vmem:[#allocation19 + $0x48] sm:$0xff] }
 0x652   :  { %1708 = vmatpush.bf16.msrb.mxu1 %v2383_v49 }
 0x656   :  { %1709 = vmatpush.bf16.msrb.mxu1 %v2382_v39 }
 0x65a   :  { %1710 = vmatpush.bf16.msrb.mxu1 %v2381_v41 }
 0x66f   :  { %v2430_v45 = vpop.permute.xlu2 %2429 }
 0x670   :  { %v2432_v48 = vunpack.i.h.bf16 %v2430_v45  ;;  %v2431_v50 = vunpack.i.l.bf16 %v2430_v45  ;;  %v2360_v45 = vld [vmem:[#allocation17 + $0x24] sm:$0xf] }
 0x672   :  { %v1261_v42 = vsel %vm660_vm14, %v1029_v32, %v2432_v48  ;;  %v956_v54 = vsel %vm660_vm14, %v3159_v11, %v2431_v50  ;;  %v2175_v32 = vor.u32 %v2367_v30, %v2174_v29  ;;  %v2152_v48 = vld [vmem:[#allocation17 + $0x28] sm:$0xf0]  ;;  %v1389_v29 = vperm.slane %v3304_v23, 4 }
 0x673   :  { %v2155_v50 = vor.u32 %v2360_v45, %v2152_v48  ;;  %v2372_v48 = vld [vmem:[#allocation19] sm:$0xff] }
 0x675   :  { %1514 = vmatpush.bf16.msrb.mxu3 %v2155_v50  ;;  %v2380_v50 = vld [vmem:[#allocation19 + $0x40] sm:$0xff] }
 0x676   :  { %1711 = vmatpush.bf16.msrb.mxu1 %v2380_v50 }
 0x69f   :  { %v2435_v46 = vpop.permute.xlu0 %2434 }
 0x6a0   :  { %v2437_v51 = vunpack.i.h.bf16 %v2435_v46  ;;  %v2436_v52 = vunpack.i.l.bf16 %v2435_v46  ;;  %v2151_v46 = vor.u32 %v2361_v44, %v2150_v43 }
 0x6a2   :  { %v958_v59 = vsel %vm957_vm0, %v956_v54, %v2436_v52  ;;  %v1262_v56 = vsel %vm957_vm0, %v1261_v42, %v2437_v51  ;;  %v2142_v51 = vld [vmem:[#allocation17 + $0x10] sm:$0xf]  ;;  %v2359_v52 = vld [vmem:[#allocation17 + $0x14] sm:$0xf0]  ;;  %v2144_v54 = vld [vmem:[#allocation17 + $0x18] sm:$0xf0] }
 0x6a3   :  { %v2143_v42 = vor.u32 %v2359_v52, %v2142_v51 }
 0x6b5   :  { %v2440_v53 = vpop.permute.xlu1 %2439 }
 0x6b6   :  { %v2442_v55 = vunpack.i.h.bf16 %v2440_v53  ;;  %v2441_v40 = vunpack.i.l.bf16 %v2440_v53  ;;  %v2358_v53 = vld [vmem:[#allocation17 + $0x14] sm:$0xf] }
 0x6b8   :  { %v1263_v17 = vsel %vm959_vm8, %v1262_v56, %v2442_v55  ;;  %v960_v60 = vsel %vm959_vm8, %v958_v59, %v2441_v40  ;;  %v2134_v55 = vld [vmem:[#allocation17] sm:$0xf]  ;;  %v2357_v40 = vld [vmem:[#allocation17 + $0x4] sm:$0xf0]  ;;  %v2147_v56 = vor.u32 %v2358_v53, %v2144_v54 }
 0x6b9   :  { %v1280_v61 = vpack.c.bf16 %v1263_v17, %v960_v60  ;;  %v2356_v17 = vld [vmem:[#allocation17 + $0x4] sm:$0xf]  ;;  %v2136_v60 = vld [vmem:[#allocation17 + $0x8] sm:$0xf0] }
 0x6ba   :  { %1515 = vmatpush.bf16.msrb.mxu3 %v2147_v56 }
 0x6bb   :  { %1338 = vmatmul.bf16.vlgmr.msra.gmra.mxu1 %v1280_v61 }
 0x738   :  { %v1339_v25 = vpop.f32.mrf.mxu1 }
 0x739   :  { %v1340_v1 = vadd.f32 %v1339_v25, %v1281_v62  ;;  %v2139_v25 = vor.u32 %v2356_v17, %v2136_v60 }
 0x73b   :  { %v1344_v12 = vadd.f32 %v1340_v1, %v3093_v57  ;;  %1516 = vmatpush.bf16.msrb.mxu3 %v2139_v25 }
 0x73d   :  { %1346 = vadd.xlane.f32.xlu1 %v1344_v12 }
 0x740   :  { %v1341_v2 = vpop.f32.mrf.mxu1 }
 0x741   :  { %v1342_v63 = vadd.f32 %v1341_v2, %v1281_v62  ;;  %v2135_v62 = vor.u32 %v2357_v40, %v2134_v55 }
 0x743   :  { %v1345_v3 = vadd.f32 %v1342_v63, %v3095_v58  ;;  %v2190_v58 = vld [vmem:[#allocation17 + $0x70] sm:$0xf] }
 0x744   :  { %v2191_v19 = vor.u32 %v2371_v16, %v2190_v58 }
 0x745   :  { %1348 = vadd.xlane.f32.xlu0 %v1345_v3 }
 0x746   :  { %1495 = vmatpush.bf16.msra.mxu2 %v2191_v19 }
 0x74a   :  { %1496 = vmatpush.bf16.msra.mxu2 %v2183_v13 }
 0x74e   :  { %1497 = vmatpush.bf16.msra.mxu2 %v2175_v32 }
 0x752   :  { %1498 = vmatpush.bf16.msra.mxu2 %v2167_v7  ;;  %v2376_v7 = vld [vmem:[#allocation19 + $0x20] sm:$0xff] }
 0x756   :  { %1499 = vmatpush.bf16.msra.mxu2 %v2159_v22  ;;  %v1409_v22 = vld [vmem:[#allocation11] sm:$0x3] }
 0x757   :  { %v1411_v43 = vperm.slane %v1409_v22, 0  ;;  %v1412_v44 = vperm.slane %v1409_v22, 1 }
 0x75a   :  { %1500 = vmatpush.bf16.msra.mxu2 %v2151_v46 }
 0x75e   :  { %1501 = vmatpush.bf16.msra.mxu2 %v2143_v42 }
 0x762   :  { %1502 = vmatpush.bf16.msra.mxu2 %v2135_v62 }
 0x7b0   :  { %v1347_v11 = vpop.xlane.xlu1 %1346 }
 0x7b1   :  { %v1350_v4 = vmul.f32 %v1347_v11, %v3073_v10 }
 0x7b3   :  { %v3292_v5 = vsub.f32 %v1344_v12, %v1350_v4 }
 0x7b5   :  { %v1354_v8 = vmul.f32 %v3292_v5, %v3292_v5 }
 0x7b7   :  { %1356 = vadd.xlane.f32.xlu2 %v1354_v8 }
 0x7b8   :  { %v1349_v47 = vpop.xlane.xlu0 %1348 }
 0x7b9   :  { %v1351_v9 = vmul.f32 %v1349_v47, %v3073_v10 }
 0x7bb   :  { %v3297_v14 = vsub.f32 %v1345_v3, %v1351_v9 }
 0x7bd   :  { %v1355_v57 = vmul.f32 %v3297_v14, %v3297_v14 }
 0x7bf   :  { %1358 = vadd.xlane.f32.xlu1 %v1355_v57 }
 0x82a   :  { %v1357_v59 = vpop.xlane.xlu2 %1356 }
 0x82b   :  { %v1360_v61 = vmul.f32 %v1357_v59, %v3073_v10 }
 0x82d   :  { %v1362_v1 = vadd.f32 1e-12, %v1360_v61 }
 0x82f   :  { %2481 = vrsqrt.f32 %v1362_v1  ;;  %vm1370_vm9 = vweird.f32 %v1362_v1 }
 0x832   :  { %v1359_v12 = vpop.xlane.xlu1 %1358 }
 0x833   :  { %v1361_v2 = vmul.f32 %v1359_v12, %v3073_v10 }
 0x835   :  { %v2482_v63 = vpop.eup %2481  ;;  %v1363_v3 = vadd.f32 1e-12, %v1361_v2 }
 0x836   :  { %v1365_v11 = vmul.f32 %v2482_v63, %v1362_v1  ;;  %vm1371_vm14 = vweird.f32 %v2482_v63 }
 0x837   :  { %2483 = vrsqrt.f32 %v1363_v3  ;;  %vm1372_vm10 = vmor %vm1370_vm9, %vm1371_vm14  ;;  %vm1380_vm3 = vweird.f32 %v1363_v3 }
 0x838   :  { %v1366_v4 = vmul.f32 %v2482_v63, %v1365_v11 }
 0x83a   :  { %v1367_v8 = vmul.f32 0.5, %v1366_v4 }
 0x83c   :  { %v1368_v47 = vsub.f32 1.5, %v1367_v8 }
 0x83d   :  { %v2484_v9 = vpop.eup %2483 }
 0x83e   :  { %v1369_v57 = vmul.f32 %v2482_v63, %v1368_v47  ;;  %v1375_v58 = vmul.f32 %v2484_v9, %v1363_v3  ;;  %vm1381_vm11 = vweird.f32 %v2484_v9 }
 0x83f   :  { %vm1382_vm12 = vmor %vm1380_vm3, %vm1381_vm11 }
 0x840   :  { %v1376_v16 = vmul.f32 %v2484_v9, %v1375_v58  ;;  %v1373_v18 = vsel %vm1372_vm10, %v2482_v63, %v1369_v57 }
 0x841   :  { %v1384_v15 = vmul.f32 %v1373_v18, %v3292_v5 }
 0x842   :  { %v1377_v19 = vmul.f32 0.5, %v1376_v16 }
 0x843   :  { %v1387_v28 = vmul.f32 %v1386_v6, %v1384_v15 }
 0x844   :  { %v1378_v20 = vsub.f32 1.5, %v1377_v19 }
 0x845   :  { %v3309_v31 = vadd.f32 %v1389_v29, %v1387_v28 }
 0x846   :  { %v1379_v27 = vmul.f32 %v2484_v9, %v1378_v20 }
 0x848   :  { %v1383_v13 = vsel %vm1382_vm12, %v2484_v9, %v1379_v27 }
 0x849   :  { %v1385_v0 = vmul.f32 %v1383_v13, %v3297_v14  ;;  %v2377_v14 = vld [vmem:[#allocation19 + $0x28] sm:$0xff] }
 0x84a   :  { %1692 = vmatpush.bf16.msra.mxu0 %v2377_v14 }
 0x84b   :  { %v1388_v30 = vmul.f32 %v1386_v6, %v1385_v0 }
 0x84d   :  { %v3311_v32 = vadd.f32 %v1389_v29, %v1388_v30 }
 0x84e   :  { %1693 = vmatpush.bf16.msra.mxu0 %v2376_v7 }
 0x84f   :  { %v1408_v5 = vpack.c.bf16 %v3311_v32, %v3309_v31 }
 0x851   :  { %1503 = vmatmul.bf16.vlgmr.msra.gmra.mxu2 %v1408_v5  ;;  %1517 = vmatmul.bf16.vlgmr.msrb.gmra.mxu3 %v1408_v5 }
 0x852   :  { %1694 = vmatpush.bf16.msra.mxu0 %v2375_v26 }
 0x856   :  { %1695 = vmatpush.bf16.msra.mxu0 %v2374_v38 }
 0x85a   :  { %1696 = vmatpush.bf16.msra.mxu0 %v2373_v24 }
 0x85e   :  { %1697 = vmatpush.bf16.msra.mxu0 %v2372_v48 }
 0x8d4   :  { %v1504_v45 = vpop.f32.mrf.mxu2  ;;  %v1518_v46 = vpop.f32.mrf.mxu3 }
 0x8d5   :  { %v1505_v51 = vadd.f32 %v1504_v45, %v1411_v43  ;;  %v1519_v52 = vadd.f32 %v1518_v46, %v1412_v44 }
 0x8d7   :  { %v1523_v53 = vmul.f32 %v1505_v51, %v1505_v51  ;;  %v1524_v42 = vmul.f32 %v1519_v52, %v1519_v52 }
 0x8d9   :  { %v1527_v54 = vmul.f32 %v1523_v53, %v1505_v51  ;;  %v1528_v55 = vmul.f32 %v1524_v42, %v1519_v52  ;;  %v2395_v53 = vld [vmem:[#allocation20 + $0x38] sm:$0xff]  ;;  %v2394_v42 = vld [vmem:[#allocation20 + $0x30] sm:$0xff] }
 0x8da   :  { %1833 = vmatpush.bf16.msrb.mxu2 %v2395_v53 }
 0x8db   :  { %v1531_v40 = vmul.f32 0.044715, %v1527_v54  ;;  %v1532_v59 = vmul.f32 0.044715, %v1528_v55  ;;  %v2392_v54 = vld [vmem:[#allocation20 + $0x20] sm:$0xff]  ;;  %v2391_v55 = vld [vmem:[#allocation20 + $0x18] sm:$0xff] }
 0x8dc   :  { %v1506_v56 = vpop.f32.mrf.mxu2  ;;  %v1520_v17 = vpop.f32.mrf.mxu3 }
 0x8dd   :  { %v1535_v60 = vadd.f32 %v1531_v40, %v1505_v51  ;;  %v1536_v61 = vadd.f32 %v1532_v59, %v1519_v52  ;;  %v1507_v62 = vadd.f32 %v1506_v56, %v1411_v43  ;;  %v1521_v25 = vadd.f32 %v1520_v17, %v1412_v44  ;;  %v2390_v40 = vld [vmem:[#allocation20 + $0x10] sm:$0xff]  ;;  %v2389_v59 = vld [vmem:[#allocation20 + $0x8] sm:$0xff] }
 0x8de   :  { %1834 = vmatpush.bf16.msrb.mxu2 %v2394_v42 }
 0x8df   :  { %v1539_v1 = vmul.f32 0.7978846, %v1535_v60  ;;  %v1525_v12 = vmul.f32 %v1507_v62, %v1507_v62  ;;  %v1526_v2 = vmul.f32 %v1521_v25, %v1521_v25  ;;  %v1540_v63 = vmul.f32 0.7978846, %v1536_v61  ;;  %v2388_v60 = vld [vmem:[#allocation20] sm:$0xff] }
 0x8e1   :  { %v1529_v3 = vmul.f32 %v1525_v12, %v1507_v62  ;;  %v1530_v11 = vmul.f32 %v1526_v2, %v1521_v25  ;;  %2485 = vtanh.f32 %v1539_v1  ;;  %v2402_v12 = vld [vmem:[#allocation22 + $0x30] sm:$0xff] }
 0x8e2   :  { %2487 = vtanh.f32 %v1540_v63 }
 0x8e3   :  { %v1533_v4 = vmul.f32 0.044715, %v1529_v3  ;;  %v1534_v8 = vmul.f32 0.044715, %v1530_v11  ;;  %v2401_v11 = vld [vmem:[#allocation22 + $0x28] sm:$0xff] }
 0x8e5   :  { %v1537_v47 = vadd.f32 %v1533_v4, %v1507_v62  ;;  %v1538_v9 = vadd.f32 %v1534_v8, %v1521_v25 }
 0x8e7   :  { %v1541_v57 = vmul.f32 0.7978846, %v1537_v47  ;;  %v1542_v58 = vmul.f32 0.7978846, %v1538_v9  ;;  %v2486_v16 = vpop.eup %2485  ;;  %v2400_v47 = vld [vmem:[#allocation22 + $0x20] sm:$0xff] }
 0x8e8   :  { %v2488_v18 = vpop.eup %2487  ;;  %v1547_v19 = vadd.f32 1.0, %v2486_v16 }
 0x8e9   :  { %2489 = vtanh.f32 %v1541_v57  ;;  %v1548_v20 = vadd.f32 1.0, %v2488_v18  ;;  %v2399_v18 = vld [vmem:[#allocation22 + $0x18] sm:$0xff] }
 0x8ea   :  { %2491 = vtanh.f32 %v1542_v58  ;;  %v1551_v27 = vmul.f32 0.5, %v1547_v19 }
 0x8eb   :  { %v1552_v0 = vmul.f32 0.5, %v1548_v20 }
 0x8ec   :  { %v1555_v5 = vmul.f32 %v1551_v27, %v1505_v51 }
 0x8ed   :  { %v1556_v34 = vmul.f32 %v1552_v0, %v1519_v52 }
 0x8ef   :  { %v2490_v15 = vpop.eup %2489 }
 0x8f0   :  { %v2492_v6 = vpop.eup %2491  ;;  %v1549_v13 = vadd.f32 1.0, %v2490_v15 }
 0x8f1   :  { %v1550_v28 = vadd.f32 1.0, %v2492_v6  ;;  %v1763_v6 = vperm.slane %v3304_v23, 7 }
 0x8f2   :  { %v1553_v29 = vmul.f32 0.5, %v1549_v13 }
 0x8f3   :  { %v1554_v30 = vmul.f32 0.5, %v1550_v28 }
 0x8f4   :  { %v1557_v33 = vmul.f32 %v1553_v29, %v1507_v62  ;;  %v2403_v62 = vld [vmem:[#allocation22 + $0x38] sm:$0xff] }
 0x8f5   :  { %v1558_v35 = vmul.f32 %v1554_v30, %v1521_v25  ;;  %1913 = vmatpush.bf16.msra.mxu3 %v2403_v62 }
 0x8f6   :  { %v1591_v21 = vpack.c.bf16 %v1557_v33, %v1555_v5 }
 0x8f7   :  { %v1592_v14 = vpack.c.bf16 %v1558_v35, %v1556_v34 }
 0x8f8   :  { %1698 = vmatmul.bf16.vlgmr.msra.gmra.mxu0 %v1591_v21  ;;  %v2398_v21 = vld [vmem:[#allocation22 + $0x10] sm:$0xff] }
 0x8f9   :  { %1712 = vmatmul.bf16.vlgmr.msrb.gmra.mxu1 %v1592_v14  ;;  %1914 = vmatpush.bf16.msra.mxu3 %v2402_v12  ;;  %v2396_v14 = vld [vmem:[#allocation22] sm:$0xff] }
 0x8fd   :  { %1915 = vmatpush.bf16.msra.mxu3 %v2401_v11 }
 0x901   :  { %1916 = vmatpush.bf16.msra.mxu3 %v2400_v47 }
 0x905   :  { %1917 = vmatpush.bf16.msra.mxu3 %v2399_v18 }
 0x909   :  { %1918 = vmatpush.bf16.msra.mxu3 %v2398_v21 }
 0x975   :  { %v1699_v7 = vpop.f32.mrf.mxu0 }
 0x976   :  { %v1700_v37 = vadd.f32 %v1699_v7, %v1593_v36  ;;  %v1713_v26 = vpop.f32.mrf.mxu1 }
 0x978   :  { %v1714_v49 = vadd.f32 %v1713_v26, %v1700_v37 }
 0x97a   :  { %v1718_v38 = vadd.f32 %v1714_v49, %v3309_v31 }
 0x97c   :  { %1720 = vadd.xlane.f32.xlu2 %v1718_v38 }
 0x97d   :  { %v1701_v39 = vpop.f32.mrf.mxu0 }
 0x97e   :  { %v1702_v22 = vadd.f32 %v1701_v39, %v1593_v36  ;;  %v1715_v24 = vpop.f32.mrf.mxu1  ;;  %v226_v36 = vld [vmem:[#allocation10 + $0x8] sm:$0xff]  ;;  %v1864_v39 = vld [vmem:[#allocation13] sm:$0x1] }
 0x980   :  { %v1716_v41 = vadd.f32 %v1715_v24, %v1702_v22 }
 0x982   :  { %v1719_v43 = vadd.f32 %v1716_v41, %v3311_v32  ;;  %v2393_v32 = vld [vmem:[#allocation20 + $0x28] sm:$0xff] }
 0x983   :  { %1835 = vmatpush.bf16.msrb.mxu2 %v2393_v32 }
 0x984   :  { %1722 = vadd.xlane.f32.xlu1 %v1719_v43 }
 0x987   :  { %1836 = vmatpush.bf16.msrb.mxu2 %v2392_v54 }
 0x98b   :  { %1837 = vmatpush.bf16.msrb.mxu2 %v2391_v55 }
 0x98f   :  { %1838 = vmatpush.bf16.msrb.mxu2 %v2390_v40 }
 0x993   :  { %1839 = vmatpush.bf16.msrb.mxu2 %v2389_v59 }
 0x997   :  { %1840 = vmatpush.bf16.msrb.mxu2 %v2388_v60 }
 0x9ef   :  { %v1721_v44 = vpop.xlane.xlu2 %1720 }
 0x9f0   :  { %v1724_v45 = vmul.f32 %v1721_v44, %v3073_v10 }
 0x9f2   :  { %v1726_v46 = vsub.f32 %v1718_v38, %v1724_v45 }
 0x9f4   :  { %v1728_v48 = vmul.f32 %v1726_v46, %v1726_v46 }
 0x9f6   :  { %1730 = vadd.xlane.f32.xlu1 %v1728_v48 }
 0x9f7   :  { %v1723_v50 = vpop.xlane.xlu1 %1722 }
 0x9f8   :  { %v1725_v51 = vmul.f32 %v1723_v50, %v3073_v10 }
 0x9fa   :  { %v3320_v52 = vsub.f32 %v1719_v43, %v1725_v51 }
 0x9fc   :  { %v1729_v31 = vmul.f32 %v3320_v52, %v3320_v52 }
 0x9fe   :  { %1732 = vadd.xlane.f32.xlu0 %v1729_v31 }
 0xa69   :  { %v1731_v56 = vpop.xlane.xlu1 %1730 }
 0xa6a   :  { %v1734_v17 = vmul.f32 %v1731_v56, %v3073_v10 }
 0xa6c   :  { %v1736_v61 = vadd.f32 1e-12, %v1734_v17 }
 0xa6e   :  { %2493 = vrsqrt.f32 %v1736_v61  ;;  %vm1744_vm15 = vweird.f32 %v1736_v61 }
 0xa71   :  { %v1733_v25 = vpop.xlane.xlu0 %1732 }
 0xa72   :  { %v1735_v1 = vmul.f32 %v1733_v25, %v3073_v10  ;;  %v1760_v10 = vperm.slane %v3304_v23, 6  ;;  %v2397_v23 = vld [vmem:[#allocation22 + $0x8] sm:$0xff] }
 0xa73   :  { %1919 = vmatpush.bf16.msra.mxu3 %v2397_v23 }
 0xa74   :  { %v2494_v2 = vpop.eup %2493  ;;  %v1737_v63 = vadd.f32 1e-12, %v1735_v1 }
 0xa75   :  { %v1739_v3 = vmul.f32 %v2494_v2, %v1736_v61  ;;  %vm1745_vm13 = vweird.f32 %v2494_v2 }
 0xa76   :  { %2495 = vrsqrt.f32 %v1737_v63  ;;  %vm1746_vm1 = vmor %vm1744_vm15, %vm1745_vm13  ;;  %vm1754_vm4 = vweird.f32 %v1737_v63 }
 0xa77   :  { %v1740_v4 = vmul.f32 %v2494_v2, %v1739_v3  ;;  %1920 = vmatpush.bf16.msra.mxu3 %v2396_v14 }
 0xa79   :  { %v1741_v8 = vmul.f32 0.5, %v1740_v4 }
 0xa7b   :  { %v1742_v9 = vsub.f32 1.5, %v1741_v8 }
 0xa7c   :  { %v2496_v57 = vpop.eup %2495 }
 0xa7d   :  { %v1743_v58 = vmul.f32 %v2494_v2, %v1742_v9  ;;  %v1749_v16 = vmul.f32 %v2496_v57, %v1737_v63  ;;  %vm1755_vm2 = vweird.f32 %v2496_v57 }
 0xa7e   :  { %vm1756_vm5 = vmor %vm1754_vm4, %vm1755_vm2 }
 0xa7f   :  { %v1747_v19 = vsel %vm1746_vm1, %v2494_v2, %v1743_v58  ;;  %v1750_v20 = vmul.f32 %v2496_v57, %v1749_v16 }
 0xa80   :  { %v1758_v15 = vmul.f32 %v1747_v19, %v1726_v46 }
 0xa81   :  { %v1751_v27 = vmul.f32 0.5, %v1750_v20 }
 0xa82   :  { %v1761_v13 = vmul.f32 %v1760_v10, %v1758_v15 }
 0xa83   :  { %v1752_v0 = vsub.f32 1.5, %v1751_v27 }
 0xa84   :  { %v1764_v28 = vadd.f32 %v1763_v6, %v1761_v13 }
 0xa85   :  { %v1753_v29 = vmul.f32 %v2496_v57, %v1752_v0 }
 0xa86   :  { %1766 = vst [vmem:[#allocation23] sm:$0xff] %v1764_v28 }
 0xa87   :  { %v1757_v30 = vsel %vm1756_vm5, %v2496_v57, %v1753_v29 }
 0xa88   :  { %v1759_v5 = vmul.f32 %v1757_v30, %v3320_v52 }
 0xa8a   :  { %v1762_v33 = vmul.f32 %v1760_v10, %v1759_v5 }
 0xa8c   :  { %v1765_v34 = vadd.f32 %v1763_v6, %v1762_v33 }
 0xa8e   :  { %v1784_v35 = vpack.c.bf16 %v1765_v34, %v1765_v34  ;;  %1767 = vst [vmem:[#allocation23 + $0x8] sm:$0xff] %v1765_v34 }
 0xa8f   :  { %1940 = dma.vmem_to_hbm [thread:$0]  %s1933_s30, 256, %s1935_s7, [#allocation7], %s2836_s1, %s2836_s1, %s2837_s28  }
 0xa90   :  { %1841 = vmatmul.bf16.vlgmr.msrb.gmra.mxu2 %v1784_v35 }
 0xb13   :  { %v1842_v7 = vpop.f32.mrf.mxu2 }
 0xb14   :  { %v1843_v37 = vadd.f32 %v1842_v7, %v226_v36 }
 0xb16   :  { %2497 = vtanh.f32 %v1843_v37 }
 0xb1b   :  { %v1844_v26 = vpop.f32.mrf.mxu2 }
 0xb1c   :  { %v2498_v49 = vpop.eup %2497 }
 0xb1d   :  { %v1863_v38 = vpack.c.bf16 %v2498_v49, %v2498_v49 }
 0xb1f   :  { %1921 = vmatmul.bf16.vlgmr.msra.gmra.mxu3 %v1863_v38 }
 0xba2   :  { %v1922_v22 = vpop.f32.mrf.mxu3 }
 0xba3   :  { %v1923_v24 = vadd.f32 %v1922_v22, %v1864_v39 }
 0xba5   :  { %v1926_v41 = vperm.slane %v1923_v24, 0 }
 0xba7   :  { %1927 = vst [vmem:[%s3352_s15] sm:$0xff] %v1926_v41 }
 0xbaa   :  { %v1924_v43 = vpop.f32.mrf.mxu3 }
 0xbab   :  { %2826 = dma.done.wait [#allocation7], 256  }
 0xbac   :  { %2827 = vsyncadd [#allocation7], 4294967040 }
 0xbad   :  { %1949 = vsyncpa [#allocation6], 1 }
 0xbae   :  { %1950 = vsyncpa [#allocation9], 1 }
 0xbaf   :  { %1951 = vsyncpa [#allocation12], 1 }
 0xbb0   :  { %1952 = vsyncpa [#allocation15], 1 }
 0xbb1   :  { %1953 = vsyncpa [#allocation18], 1 }
 0xbb2   :  { %1954 = vsyncpa [#allocation21], 1 }
 0xbb3   :  { %1955 = vsyncpa [#allocation7], 1 }

</bundles_post_ra>
